<compile_context>
chip_gen: v7x
topology: tpu7x:2x2x1
jax: 0.10.0
libtpu: 0.0.40
codegen_flags: <defaults>
</compile_context>

<pallas_src>
import functools

import jax
import jax.numpy as jnp
from jax.experimental import pallas as pl
from jax.experimental.pallas import tpu as pltpu

# adaround_reg constants (zeta, gamma) and AdaQLayer drop_ratio.
ZETA = 1.1
GAMMA = -0.1
DROP_RATIO = 0.5
# uint32 bits < threshold  <=>  U[0,1) < DROP_RATIO
_DROP_THRESHOLD_U32 = int(DROP_RATIO * (1 << 32))  # 2**31 for 0.5


# ---------------------------------------------------------------------------
# Stage 1: AdaRound soft weight de-quantization, done ONCE (not per M tile).
# Inputs are already transposed to (K, O) so the GEMM kernel gets MXU-native layout.
# ---------------------------------------------------------------------------
def dequant_weight_kernel(w_ref, mask_ref, scale_ref, qmin_ref, qmax_ref, qw_ref):
    # w_ref/mask_ref: (K_pad, O_pad); scale/qmin/qmax: (1, O_pad) broadcast over K.
    scale = scale_ref[...]
    # adaround_reg().rectified_sigmoid(round_mask)
    h = jnp.clip((ZETA - GAMMA) * jax.nn.sigmoid(mask_ref[...]) + GAMMA, 0.0, 1.0)
    qw = jnp.floor(w_ref[...] / scale) + h
    qw = jnp.maximum(qw, qmin_ref[...])      # per-channel clamp (per_channel=True)
    qw = jnp.minimum(qw, qmax_ref[...])
    qw_ref[...] = qw * scale


# ---------------------------------------------------------------------------
# Stage 2: conv-as-im2col GEMM + bias + ReLU + linear activation fake-quant.
# ---------------------------------------------------------------------------
def adaq_matmul_kernel(
    patches_ref,   # (TM, K_pad)     VMEM  im2col patches tile
    qw_ref,        # (K_pad, O_pad)  VMEM  dequantized weight (grid-invariant)
    bias_ref,      # (1, O_pad)      VMEM
    rand_ref,      # (TM, O_pad)     VMEM  uint32 random bits for the stochastic drop
    acti_ref,      # (4,)            SMEM  [1/a_scale, a_scale, a_qmin, a_qmax]
    out_ref,       # (TM, O_pad)     VMEM
):
    # F.conv2d as GEMM on the MXU, f32 accumulate. No in-kernel transpose.
    acc = jnp.dot(patches_ref[...], qw_ref[...], preferred_element_type=jnp.float32)
    acc = acc + bias_ref[...]                 # (1, O_pad) broadcast

    # ReLU (relu_flag=True)
    acc = jnp.maximum(acc, 0.0)

    # quant_acti (type 'Linear'): multiply by precomputed reciprocal (no per-element div)
    inv_scale = acti_ref[0]
    a_scale = acti_ref[1]
    a_qmin = acti_ref[2]
    a_qmax = acti_ref[3]
    xq = jnp.round(acc * inv_scale)           # round-half-to-even == torch.round
    xq = jnp.maximum(xq, a_qmin)
    xq = jnp.minimum(xq, a_qmax)
    xq = xq * a_scale

    # torch.where(torch.rand_like(x) < drop_ratio, x_q, x_ori) as integer threshold compare
    keep = rand_ref[...] < jnp.uint32(_DROP_THRESHOLD_U32)
    out_ref[...] = jnp.where(keep, xq, acc)


# ---------------------------------------------------------------------------
# Host-side glue.
# ---------------------------------------------------------------------------
def _round_up(x, m):
    return ((x + m - 1) // m) * m


def _pad2(x, shape, value=0.0):
    pads = [(0, t - s) for s, t in zip(x.shape, shape)]
    if all(p == (0, 0) for p in pads):
        return x
    return jnp.pad(x, pads, constant_values=value)


def _im2col_nchw(x, kh, kw, stride, pad):
    """x: (N, C, H, W) -> patches (N*Ho*Wo, C*kh*kw), matching weight.reshape(O, C*kh*kw)."""
    n, c, h, w = x.shape
    xp = jnp.pad(x, ((0, 0), (0, 0), (pad, pad), (pad, pad)))
    ho = (h + 2 * pad - kh) // stride + 1
    wo = (w + 2 * pad - kw) // stride + 1
    cols = []
    for i in range(kh):
        for j in range(kw):
            cols.append(xp[:, :, i:i + stride * ho:stride, j:j + stride * wo:stride])
    # (kh, kw, N, C, Ho, Wo) -> (N, Ho, Wo, C, kh, kw)
    p = jnp.stack(cols, axis=0).reshape(kh, kw, n, c, ho, wo)
    p = p.transpose(2, 4, 5, 3, 0, 1)
    return p.reshape(n * ho * wo, c * kh * kw), ho, wo
    # TODO(synk): for large inputs, build patches per-tile inside the kernel
    # (memory_space=pl.ANY + manual DMA) instead of materializing (M, K) in HBM.


@functools.partial(jax.jit, static_argnames=("stride", "pad", "tm"))
def adaq_conv_forward(x, weight, bias, round_mask, w_scale, w_qmin, w_qmax,
                      a_scale, a_qmin, a_qmax, rng_key, *, stride=1, pad=1, tm=256):
    n, c, h, w = x.shape
    o, _, kh, kw = weight.shape
    patches, ho, wo = _im2col_nchw(x, kh, kw, stride, pad)   # (M, K)
    m, k = patches.shape

    # Pad to lane/sublane-friendly, lane-dense shapes (all padding is zeros and is
    # sliced off at the end; padded K columns of patches are zero so they never
    # contribute to the GEMM).
    k_pad = _round_up(k, 128)
    o_pad = _round_up(o, 128)
    m_pad = _round_up(m, tm)

    patches_p = _pad2(patches, (m_pad, k_pad))

    # Weight / mask pre-transposed to (K, O) in the wrapper -> MXU-native [M,K]x[K,N].
    w_t = _pad2(weight.reshape(o, k).T, (k_pad, o_pad))
    mask_t = _pad2(round_mask.reshape(o, k).T, (k_pad, o_pad))
    # clamp scale away from 0 (avoids inf/NaN for dead channels); pad scale with 1.0
    scale_row = _pad2(jnp.maximum(w_scale, 1e-8).reshape(1, o), (1, o_pad), value=1.0)
    qmin_row = _pad2(w_qmin.reshape(1, o), (1, o_pad))
    qmax_row = _pad2(w_qmax.reshape(1, o), (1, o_pad))
    bias_row = _pad2(bias.reshape(1, o), (1, o_pad))

    # ---- Stage 1: dequantize the weight once ----
    qw = pl.pallas_call(
        dequant_weight_kernel,
        out_shape=jax.ShapeDtypeStruct((k_pad, o_pad), jnp.float32),
        grid=(1,),
        in_specs=[
            pl.BlockSpec((k_pad, o_pad), lambda i: (0, 0)),   # weight (K, O)
            pl.BlockSpec((k_pad, o_pad), lambda i: (0, 0)),   # round_mask (K, O)
            pl.BlockSpec((1, o_pad), lambda i: (0, 0)),       # w_scale
            pl.BlockSpec((1, o_pad), lambda i: (0, 0)),       # w_qmin
            pl.BlockSpec((1, o_pad), lambda i: (0, 0)),       # w_qmax
        ],
        out_specs=pl.BlockSpec((k_pad, o_pad), lambda i: (0, 0)),
    )(w_t, mask_t, scale_row, qmin_row, qmax_row)

    # Activation-quant scalars packed for SMEM: [1/scale, scale, q_min, q_max].
    a_scale_f = a_scale.reshape(()).astype(jnp.float32)
    acti_params = jnp.stack([
        1.0 / a_scale_f,
        a_scale_f,
        a_qmin.reshape(()).astype(jnp.float32),
        a_qmax.reshape(()).astype(jnp.float32),
    ])

    # Bernoulli mask source: uint32 bits (generated outside the kernel).
    rand_bits = jax.random.bits(rng_key, (m_pad, o_pad), dtype=jnp.uint32)

    # ---- Stage 2: tiled GEMM + bias + ReLU + acti fake-quant ----
    grid = (m_pad // tm,)
    out2d = pl.pallas_call(
        adaq_matmul_kernel,
        out_shape=jax.ShapeDtypeStruct((m_pad, o_pad), jnp.float32),
        grid=grid,
        in_specs=[
            pl.BlockSpec((tm, k_pad), lambda i: (i, 0)),            # patches tile
            pl.BlockSpec((k_pad, o_pad), lambda i: (0, 0)),         # qw (grid-invariant)
            pl.BlockSpec((1, o_pad), lambda i: (0, 0)),             # bias
            pl.BlockSpec((tm, o_pad), lambda i: (i, 0)),            # random bits tile
            pl.BlockSpec(memory_space=pltpu.MemorySpace.SMEM),      # acti scalars
        ],
        out_specs=pl.BlockSpec((tm, o_pad), lambda i: (i, 0)),
        compiler_params=pltpu.CompilerParams(
            dimension_semantics=("parallel",),       # M tiles are independent
            vmem_limit_bytes=48 * 1024 * 1024),      # explicit budget (< v7x 64 MiB)
    )(patches_p, qw, bias_row, rand_bits, acti_params)

    # (M_pad, O_pad) -> (M, O) -> (N, Ho, Wo, O) -> NCHW (matching the PyTorch layer)
    out2d = out2d[:m, :o]
    return out2d.reshape(n, ho, wo, o).transpose(0, 3, 1, 2)


if __name__ == "__main__":
    key = jax.random.PRNGKey(0)
    k1, k2, k3, k_drop = jax.random.split(key, 4)

    # Conv config: N=2, C=4, H=W=16, O=8, 3x3 kernel, stride=1, pad=1 (same spatial size).
    N, C, H, W = 2, 4, 16, 16
    O, KH, KW = 8, 3, 3

    x = jax.random.normal(k1, (N, C, H, W), jnp.float32)
    weight = jax.random.normal(k2, (O, C, KH, KW), jnp.float32) * 0.1
    bias = jax.random.normal(k3, (O,), jnp.float32) * 0.01

    # qw_tensor: per-channel symmetric int8 'Linear' quant params.
    wf = weight.reshape(O, -1)
    w_absmax = jnp.max(jnp.abs(wf), axis=1, keepdims=True)
    w_scale = w_absmax / 127.0                          # (O, 1)
    w_qmin = jnp.full((O, 1), -128.0, jnp.float32)
    w_qmax = jnp.full((O, 1), 127.0, jnp.float32)

    # AdaQLayer.__init__: rest = frac(w / scale); round_mask = -log((zeta-gamma)/(rest-gamma) - 1)
    rest = wf / w_scale - jnp.floor(wf / w_scale)
    rest = jnp.clip(rest, 1e-4, 1.0 - 1e-4)
    round_mask = -jnp.log((ZETA - GAMMA) / (rest - GAMMA) - 1.0)
    round_mask = round_mask.reshape(O, C, KH, KW)

    # qi_tensor: 'Linear' activation quant params.
    a_scale = jnp.full((1, 1), 0.02, jnp.float32)
    a_qmin = jnp.full((1, 1), -128.0, jnp.float32)
    a_qmax = jnp.full((1, 1), 127.0, jnp.float32)

    out = adaq_conv_forward(x, weight, bias, round_mask, w_scale, w_qmin, w_qmax,
                            a_scale, a_qmin, a_qmax, k_drop, stride=1, pad=1, tm=256)
    jax.block_until_ready(out)
    assert out.shape == (N, O, H, W), out.shape
    assert bool(jnp.all(jnp.isfinite(out)))
    print("KERNEL_OK")
</pallas_src>

<mosaic_0001>
module attributes {stable_mosaic.version = 11 : i64} {
  func.func @dequant_weight_kernel(%arg0: i32, %arg1: memref<128x128xf32, #tpu.memory_space<vmem>>, %arg2: memref<128x128xf32, #tpu.memory_space<vmem>>, %arg3: memref<1x128xf32, #tpu.memory_space<vmem>>, %arg4: memref<1x128xf32, #tpu.memory_space<vmem>>, %arg5: memref<1x128xf32, #tpu.memory_space<vmem>>, %arg6: memref<128x128xf32, #tpu.memory_space<vmem>>) attributes {dimension_semantics = [#tpu.dimension_semantics<arbitrary>], iteration_bounds = array<i64: 1>, scalar_prefetch = 0 : i64, scratch_operands = 0 : i64, tpu.core_type = #tpu.core_type<tc>, window_params = [{pipeline_mode = #tpu.pipeline_mode<synchronous>, transform_indices = @transform_0, window_bounds = array<i64: 128, 128>}, {pipeline_mode = #tpu.pipeline_mode<synchronous>, transform_indices = @transform_1, window_bounds = array<i64: 128, 128>}, {pipeline_mode = #tpu.pipeline_mode<synchronous>, transform_indices = @transform_2, window_bounds = array<i64: 1, 128>}, {pipeline_mode = #tpu.pipeline_mode<synchronous>, transform_indices = @transform_3, window_bounds = array<i64: 1, 128>}, {pipeline_mode = #tpu.pipeline_mode<synchronous>, transform_indices = @transform_4, window_bounds = array<i64: 1, 128>}, {pipeline_mode = #tpu.pipeline_mode<synchronous>, transform_indices = @transform_5, window_bounds = array<i64: 128, 128>}]} {
    %c0 = arith.constant 0 : index
    %c0_0 = arith.constant 0 : index
    %0 = vector.load %arg3[%c0, %c0_0] : memref<1x128xf32, #tpu.memory_space<vmem>>, vector<1x128xf32>
    %c0_1 = arith.constant 0 : index
    %c0_2 = arith.constant 0 : index
    %1 = vector.load %arg2[%c0_1, %c0_2] : memref<128x128xf32, #tpu.memory_space<vmem>>, vector<128x128xf32>
    %2 = arith.negf %1 : vector<128x128xf32>
    %3 = math.exp %2 : vector<128x128xf32>
    %cst = arith.constant 1.000000e+00 : f32
    %4 = vector.broadcast %cst : f32 to vector<128x128xf32>
    %5 = arith.addf %4, %3 : vector<128x128xf32>
    %6 = arith.divf %4, %5 : vector<128x128xf32>
    %cst_3 = arith.constant 1.200000e+00 : f32
    %7 = vector.broadcast %cst_3 : f32 to vector<128x128xf32>
    %8 = arith.mulf %7, %6 : vector<128x128xf32>
    %cst_4 = arith.constant -1.000000e-01 : f32
    %9 = vector.broadcast %cst_4 : f32 to vector<128x128xf32>
    %10 = arith.addf %8, %9 : vector<128x128xf32>
    %cst_5 = arith.constant 0.000000e+00 : f32
    %cst_6 = arith.constant 1.000000e+00 : f32
    %11 = vector.broadcast %cst_5 : f32 to vector<128x128xf32>
    %12 = arith.maximumf %11, %10 : vector<128x128xf32>
    %13 = vector.broadcast %cst_6 : f32 to vector<128x128xf32>
    %14 = arith.minimumf %13, %12 : vector<128x128xf32>
    %c0_7 = arith.constant 0 : index
    %c0_8 = arith.constant 0 : index
    %15 = vector.load %arg1[%c0_7, %c0_8] : memref<128x128xf32, #tpu.memory_space<vmem>>, vector<128x128xf32>
    %16 = vector.broadcast %0 : vector<1x128xf32> to vector<128x128xf32>
    %17 = arith.divf %15, %16 : vector<128x128xf32>
    %18 = math.floor %17 : vector<128x128xf32>
    %19 = arith.addf %18, %14 : vector<128x128xf32>
    %c0_9 = arith.constant 0 : index
    %c0_10 = arith.constant 0 : index
    %20 = vector.load %arg4[%c0_9, %c0_10] : memref<1x128xf32, #tpu.memory_space<vmem>>, vector<1x128xf32>
    %21 = vector.broadcast %20 : vector<1x128xf32> to vector<128x128xf32>
    %22 = arith.maximumf %19, %21 : vector<128x128xf32>
    %c0_11 = arith.constant 0 : index
    %c0_12 = arith.constant 0 : index
    %23 = vector.load %arg5[%c0_11, %c0_12] : memref<1x128xf32, #tpu.memory_space<vmem>>, vector<1x128xf32>
    %24 = vector.broadcast %23 : vector<1x128xf32> to vector<128x128xf32>
    %25 = arith.minimumf %22, %24 : vector<128x128xf32>
    %26 = vector.broadcast %0 : vector<1x128xf32> to vector<128x128xf32>
    %27 = arith.mulf %25, %26 : vector<128x128xf32>
    %c0_13 = arith.constant 0 : index
    %c0_14 = arith.constant 0 : index
    %28 = vector.load %arg6[%c0_13, %c0_14] : memref<128x128xf32, #tpu.memory_space<vmem>>, vector<128x128xf32>
    tpu.vector_store %arg6[%c0_13, %c0_14], %27 {strides = array<i32>} : memref<128x128xf32, #tpu.memory_space<vmem>>, vector<128x128xf32>,
    return
  }
  func.func @transform_0(%arg0: i32) -> (i32, i32) {
    %c0_i32 = arith.constant 0 : i32
    %c0_i32_0 = arith.constant 0 : i32
    %c0_i32_1 = arith.constant 0 : i32
    return %c0_i32, %c0_i32_0 : i32, i32
  }
  func.func @transform_1(%arg0: i32) -> (i32, i32) {
    %c0_i32 = arith.constant 0 : i32
    %c0_i32_0 = arith.constant 0 : i32
    %c0_i32_1 = arith.constant 0 : i32
    return %c0_i32, %c0_i32_0 : i32, i32
  }
  func.func @transform_2(%arg0: i32) -> (i32, i32) {
    %c0_i32 = arith.constant 0 : i32
    %c0_i32_0 = arith.constant 0 : i32
    %c0_i32_1 = arith.constant 0 : i32
    return %c0_i32, %c0_i32_0 : i32, i32
  }
  func.func @transform_3(%arg0: i32) -> (i32, i32) {
    %c0_i32 = arith.constant 0 : i32
    %c0_i32_0 = arith.constant 0 : i32
    %c0_i32_1 = arith.constant 0 : i32
    return %c0_i32, %c0_i32_0 : i32, i32
  }
  func.func @transform_4(%arg0: i32) -> (i32, i32) {
    %c0_i32 = arith.constant 0 : i32
    %c0_i32_0 = arith.constant 0 : i32
    %c0_i32_1 = arith.constant 0 : i32
    return %c0_i32, %c0_i32_0 : i32, i32
  }
  func.func @transform_5(%arg0: i32) -> (i32, i32) {
    %c0_i32 = arith.constant 0 : i32
    %c0_i32_0 = arith.constant 0 : i32
    %c0_i32_1 = arith.constant 0 : i32
    return %c0_i32, %c0_i32_0 : i32, i32
  }
}

module attributes {stable_mosaic.version = 11 : i64} {
  func.func @adaq_matmul_kernel(%arg0: i32, %arg1: memref<256x128xf32, #tpu.memory_space<vmem>>, %arg2: memref<128x128xf32, #tpu.memory_space<vmem>>, %arg3: memref<1x128xf32, #tpu.memory_space<vmem>>, %arg4: memref<256x128xi32, #tpu.memory_space<vmem>>, %arg5: memref<4xf32, #tpu.memory_space<smem>>, %arg6: memref<256x128xf32, #tpu.memory_space<vmem>>) attributes {dimension_semantics = [#tpu.dimension_semantics<parallel>], iteration_bounds = array<i64: 2>, scalar_prefetch = 0 : i64, scratch_operands = 0 : i64, tpu.core_type = #tpu.core_type<tc>, window_params = [{transform_indices = @transform_0, window_bounds = array<i64: 256, 128>}, {pipeline_mode = #tpu.pipeline_mode<synchronous>, transform_indices = @transform_1, window_bounds = array<i64: 128, 128>}, {pipeline_mode = #tpu.pipeline_mode<synchronous>, transform_indices = @transform_2, window_bounds = array<i64: 1, 128>}, {transform_indices = @transform_3, window_bounds = array<i64: 256, 128>}, {transform_indices = @transform_4, window_bounds = array<i64: 4>}, {transform_indices = @transform_5, window_bounds = array<i64: 256, 128>}]} {
    %c0 = arith.constant 0 : index
    %c0_0 = arith.constant 0 : index
    %0 = vector.load %arg1[%c0, %c0_0] : memref<256x128xf32, #tpu.memory_space<vmem>>, vector<256x128xf32>
    %c0_1 = arith.constant 0 : index
    %c0_2 = arith.constant 0 : index
    %1 = vector.load %arg2[%c0_1, %c0_2] : memref<128x128xf32, #tpu.memory_space<vmem>>, vector<128x128xf32>
    %cst = arith.constant dense<0.000000e+00> : vector<256x128xf32>
    %2 = tpu.matmul %0, %1, %cst {dimension_numbers = #tpu.dot_dimension_numbers<[1], [0], [0], [1], [0, 0, 1, 1], [], []>} : vector<256x128xf32>, vector<128x128xf32>, vector<256x128xf32> -> vector<256x128xf32>
    %c0_3 = arith.constant 0 : index
    %c0_4 = arith.constant 0 : index
    %3 = vector.load %arg3[%c0_3, %c0_4] : memref<1x128xf32, #tpu.memory_space<vmem>>, vector<1x128xf32>
    %4 = vector.broadcast %3 : vector<1x128xf32> to vector<256x128xf32>
    %5 = arith.addf %2, %4 : vector<256x128xf32>
    %cst_5 = arith.constant 0.000000e+00 : f32
    %6 = vector.broadcast %cst_5 : f32 to vector<256x128xf32>
    %7 = arith.maximumf %5, %6 : vector<256x128xf32>
    %c0_6 = arith.constant 0 : index
    %8 = memref.load %arg5[%c0_6] : memref<4xf32, #tpu.memory_space<smem>>
    %c1 = arith.constant 1 : index
    %9 = memref.load %arg5[%c1] : memref<4xf32, #tpu.memory_space<smem>>
    %c2 = arith.constant 2 : index
    %10 = memref.load %arg5[%c2] : memref<4xf32, #tpu.memory_space<smem>>
    %c3 = arith.constant 3 : index
    %11 = memref.load %arg5[%c3] : memref<4xf32, #tpu.memory_space<smem>>
    %12 = vector.broadcast %8 : f32 to vector<256x128xf32>
    %13 = arith.mulf %7, %12 : vector<256x128xf32>
    %14 = math.roundeven %13 : vector<256x128xf32>
    %15 = vector.broadcast %10 : f32 to vector<256x128xf32>
    %16 = arith.maximumf %14, %15 : vector<256x128xf32>
    %17 = vector.broadcast %11 : f32 to vector<256x128xf32>
    %18 = arith.minimumf %16, %17 : vector<256x128xf32>
    %19 = vector.broadcast %9 : f32 to vector<256x128xf32>
    %20 = arith.mulf %18, %19 : vector<256x128xf32>
    %c0_7 = arith.constant 0 : index
    %c0_8 = arith.constant 0 : index
    %21 = vector.load %arg4[%c0_7, %c0_8] : memref<256x128xi32, #tpu.memory_space<vmem>>, vector<256x128xi32>
    %c-2147483648_i32 = arith.constant -2147483648 : i32
    %22 = vector.broadcast %c-2147483648_i32 : i32 to vector<256x128xi32>
    %23 = arith.cmpi ult, %21, %22 : vector<256x128xi32>
    %24 = arith.select %23, %20, %7 : vector<256x128xi1>, vector<256x128xf32>
    %c0_9 = arith.constant 0 : index
    %c0_10 = arith.constant 0 : index
    %25 = vector.load %arg6[%c0_9, %c0_10] : memref<256x128xf32, #tpu.memory_space<vmem>>, vector<256x128xf32>
    tpu.vector_store %arg6[%c0_9, %c0_10], %24 {strides = array<i32>} : memref<256x128xf32, #tpu.memory_space<vmem>>, vector<256x128xf32>,
    return
  }
  func.func @transform_0(%arg0: i32) -> (i32, i32) {
    %c0_i32 = arith.constant 0 : i32
    %c0_i32_0 = arith.constant 0 : i32
    return %arg0, %c0_i32 : i32, i32
  }
  func.func @transform_1(%arg0: i32) -> (i32, i32) {
    %c0_i32 = arith.constant 0 : i32
    %c0_i32_0 = arith.constant 0 : i32
    %c0_i32_1 = arith.constant 0 : i32
    return %c0_i32, %c0_i32_0 : i32, i32
  }
  func.func @transform_2(%arg0: i32) -> (i32, i32) {
    %c0_i32 = arith.constant 0 : i32
    %c0_i32_0 = arith.constant 0 : i32
    %c0_i32_1 = arith.constant 0 : i32
    return %c0_i32, %c0_i32_0 : i32, i32
  }
  func.func @transform_3(%arg0: i32) -> (i32, i32) {
    %c0_i32 = arith.constant 0 : i32
    %c0_i32_0 = arith.constant 0 : i32
    return %arg0, %c0_i32 : i32, i32
  }
  func.func @transform_4(%arg0: i32) -> i32 {
    %c0_i32 = arith.constant 0 : i32
    %c0_i32_0 = arith.constant 0 : i32
    return %c0_i32 : i32
  }
  func.func @transform_5(%arg0: i32) -> (i32, i32) {
    %c0_i32 = arith.constant 0 : i32
    %c0_i32_0 = arith.constant 0 : i32
    return %arg0, %c0_i32 : i32, i32
  }
}

</mosaic_0001>

<bundles_post_ra>
// kernel: adaq_conv_forward.2
= control target key start
LH: loop header
LB: loop body
LE: loop exit
PB: predicated region body
PF: predicated region fallthrough
CT: control target
= control target key end

     0   :  { %s734_s1 = inlined_call_operand.vmem [shape: f32[128,128], index: 1, kind: input, shape index: {}]   ;;  %s735_s2 = inlined_call_operand.vmem [shape: f32[1,128], index: 2, kind: input, shape index: {}]   ;;  %s736_s0 = inlined_call_operand.vmem [shape: f32[128,128], index: 0, kind: input, shape index: {}]   ;;  %s737_s3 = inlined_call_operand.vmem [shape: f32[1,128], index: 3, kind: input, shape index: {}]   ;;  %s738_s4 = inlined_call_operand.vmem [shape: f32[1,128], index: 4, kind: input, shape index: {}]   ;;  %s739_s5 = inlined_call_operand.vmem [shape: f32[128,128], index: 5, kind: output, shape index: {}]  }
   0x1   :  { %v21_v0 = vld [vmem:[%s734_s1] sm:$0xff]  ;;  %v22_v3 = vld [vmem:[%s734_s1 + $0x8] sm:$0xff]  ;;  %v23_v4 = vld [vmem:[%s734_s1 + $0x10] sm:$0xff] }
   0x2   :  { %v471_v1 = vld [vmem:[%s735_s2] ss:$0 sm:$0xff]  ;;  %v350_v2 = vmul.f32 -1.442695, %v21_v0  ;;  %v351_v5 = vmul.f32 -1.442695, %v22_v3 }
   0x3   :  { %v352_v6 = vmul.f32 -1.442695, %v23_v4  ;;  %v24_v7 = vld [vmem:[%s734_s1 + $0x18] sm:$0xff]  ;;  %v25_v9 = vld [vmem:[%s734_s1 + $0x20] sm:$0xff]  ;;  %v26_v11 = vld [vmem:[%s734_s1 + $0x28] sm:$0xff] }
   0x4   :  { %369 = vpow2.f32 %v350_v2  ;;  %v353_v8 = vmul.f32 -1.442695, %v24_v7  ;;  %v354_v10 = vmul.f32 -1.442695, %v25_v9  ;;  %v27_v12 = vld [vmem:[%s734_s1 + $0x30] sm:$0xff]  ;;  %v28_v15 = vld [vmem:[%s734_s1 + $0x38] sm:$0xff] }
   0x5   :  { %371 = vrcp.f32 %v471_v1  ;;  %v355_v13 = vmul.f32 -1.442695, %v26_v11  ;;  %v356_v14 = vmul.f32 -1.442695, %v27_v12  ;;  %v357_v16 = vmul.f32 -1.442695, %v28_v15 }
   0x6   :  { %373 = vpow2.f32 %v351_v5  ;;  %v29_v17 = vld [vmem:[%s734_s1 + $0x40] sm:$0xff]  ;;  %v30_v28 = vld [vmem:[%s734_s1 + $0x48] sm:$0xff]  ;;  %v199_v31 = vld [vmem:[%s736_s0 + $0x10] sm:$0xff] }
   0x7   :  { %375 = vpow2.f32 %v352_v6  ;;  %v358_v19 = vmul.f32 -1.442695, %v29_v17  ;;  %v197_v26 = vld [vmem:[%s736_s0] sm:$0xff]  ;;  %v198_v30 = vld [vmem:[%s736_s0 + $0x8] sm:$0xff]  ;;  %v200_v34 = vld [vmem:[%s736_s0 + $0x18] sm:$0xff] }
   0x8   :  { %377 = vpow2.f32 %v353_v8  ;;  %v201_v36 = vld [vmem:[%s736_s0 + $0x20] sm:$0xff]  ;;  %v202_v40 = vld [vmem:[%s736_s0 + $0x28] sm:$0xff]  ;;  %v359_v41 = vmul.f32 -1.442695, %v30_v28  ;;  %v31_v42 = vld [vmem:[%s734_s1 + $0x50] sm:$0xff] }
   0x9   :  { %379 = vpow2.f32 %v354_v10  ;;  %v32_v47 = vld [vmem:[%s734_s1 + $0x58] sm:$0xff]  ;;  %v33_v48 = vld [vmem:[%s734_s1 + $0x60] sm:$0xff]  ;;  %v203_v51 = vld [vmem:[%s736_s0 + $0x30] sm:$0xff]  ;;  %v360_v55 = vmul.f32 -1.442695, %v31_v42 }
   0xa   :  { %381 = vpow2.f32 %v355_v13  ;;  %v204_v53 = vld [vmem:[%s736_s0 + $0x38] sm:$0xff]  ;;  %v361_v56 = vmul.f32 -1.442695, %v32_v47  ;;  %v362_v57 = vmul.f32 -1.442695, %v33_v48  ;;  %v34_v58 = vld [vmem:[%s734_s1 + $0x68] sm:$0xff] }
   0xb   :  { %383 = vpow2.f32 %v356_v14  ;;  %v205_v63 = vld [vmem:[%s736_s0 + $0x40] sm:$0xff]  ;;  %v35_v0 = vld [vmem:[%s734_s1 + $0x70] sm:$0xff]  ;;  %v363_v9 = vmul.f32 -1.442695, %v34_v58  ;;  %v36_v10 = vld [vmem:[%s734_s1 + $0x78] sm:$0xff] }
   0xc   :  { %385 = vpow2.f32 %v357_v16  ;;  %v364_v14 = vmul.f32 -1.442695, %v35_v0 }
   0xe   :  { %v370_v18 = vpop.eup %369 }
   0xf   :  { %v498_v20 = vpop.eup %371  ;;  %v85_v21 = vadd.f32 1.0, %v370_v18 }
  0x10   :  { %v374_v22 = vpop.eup %373  ;;  %v519_v38 = vmul.f32 %v498_v20, %v197_v26  ;;  %v528_v44 = vmul.f32 %v498_v20, %v198_v30  ;;  %v531_v45 = vmul.f32 %v498_v20, %v199_v31  ;;  %v540_v49 = vmul.f32 %v498_v20, %v200_v34 }
  0x11   :  { %v376_v23 = vpop.eup %375  ;;  %387 = vrcp.f32 %v85_v21  ;;  %v86_v24 = vadd.f32 1.0, %v374_v22  ;;  %v543_v50 = vmul.f32 %v498_v20, %v201_v36  ;;  %v552_v54 = vmul.f32 %v498_v20, %v202_v40 }
  0x12   :  { %v378_v25 = vpop.eup %377  ;;  %v87_v27 = vadd.f32 1.0, %v376_v23  ;;  %389 = vpow2.f32 %v358_v19  ;;  %v236_v59 = vfloor.f32 %v519_v38  ;;  %v237_v60 = vfloor.f32 %v528_v44 }
  0x13   :  { %v380_v29 = vpop.eup %379  ;;  %391 = vrcp.f32 %v86_v24  ;;  %v88_v32 = vadd.f32 1.0, %v378_v25  ;;  %v560_v61 = vmul.f32 %v498_v20, %v203_v51  ;;  %v563_v62 = vmul.f32 %v498_v20, %v204_v53 }
  0x14   :  { %v382_v33 = vpop.eup %381  ;;  %393 = vrcp.f32 %v87_v27  ;;  %v89_v35 = vadd.f32 1.0, %v380_v29  ;;  %v238_v3 = vfloor.f32 %v531_v45  ;;  %v239_v4 = vfloor.f32 %v540_v49  ;;  %v586_v29 = vld [vmem:[%s737_s3] ss:$0 sm:$0xff] }
  0x15   :  { %v384_v37 = vpop.eup %383  ;;  %395 = vrcp.f32 %v88_v32  ;;  %v90_v39 = vadd.f32 1.0, %v382_v33  ;;  %v240_v5 = vfloor.f32 %v543_v50  ;;  %v241_v8 = vfloor.f32 %v552_v54 }
  0x16   :  { %v386_v43 = vpop.eup %385  ;;  %397 = vrcp.f32 %v89_v35  ;;  %v91_v46 = vadd.f32 1.0, %v384_v37  ;;  %v579_v13 = vmul.f32 %v498_v20, %v205_v63  ;;  %v242_v18 = vfloor.f32 %v560_v61 }
  0x17   :  { %399 = vrcp.f32 %v90_v39  ;;  %v92_v52 = vadd.f32 1.0, %v386_v43  ;;  %v243_v22 = vfloor.f32 %v563_v62  ;;  %v365_v23 = vmul.f32 -1.442695, %v36_v10  ;;  %v592_v43 = vld [vmem:[%s738_s4] ss:$0 sm:$0xff] }
  0x18   :  { %401 = vrcp.f32 %v91_v46  ;;  %v244_v32 = vfloor.f32 %v579_v13  ;;  %v208_v13 = vld [vmem:[%s736_s0 + $0x58] sm:$0xff] }
  0x19   :  { %403 = vrcp.f32 %v92_v52 }
  0x1a   :  { %405 = vpow2.f32 %v359_v41 }
  0x1b   :  { %v388_v2 = vpop.eup %387  ;;  %407 = vpow2.f32 %v360_v55 }
  0x1c   :  { %v390_v6 = vpop.eup %389  ;;  %v133_v7 = vmul.f32 1.2, %v388_v2  ;;  %409 = vpow2.f32 %v361_v56 }
  0x1d   :  { %v392_v11 = vpop.eup %391  ;;  %v93_v12 = vadd.f32 1.0, %v390_v6  ;;  %411 = vpow2.f32 %v362_v57 }
  0x1e   :  { %v394_v15 = vpop.eup %393  ;;  %v149_v16 = vadd.f32 -0.1, %v133_v7  ;;  %v134_v17 = vmul.f32 1.2, %v392_v11 }
  0x1f   :  { %v396_v19 = vpop.eup %395  ;;  %v135_v21 = vmul.f32 1.2, %v394_v15  ;;  %413 = vrcp.f32 %v93_v12 }
  0x20   :  { %v398_v24 = vpop.eup %397  ;;  %v165_v25 = vmax.f32 %v149_v16, 0.0  ;;  %v150_v26 = vadd.f32 -0.1, %v134_v17  ;;  %v136_v27 = vmul.f32 1.2, %v396_v19  ;;  %415 = vpow2.f32 %v363_v9 }
  0x21   :  { %v400_v28 = vpop.eup %399  ;;  %v151_v30 = vadd.f32 -0.1, %v135_v21  ;;  %v137_v31 = vmul.f32 1.2, %v398_v24  ;;  %417 = vpow2.f32 %v364_v14 }
  0x22   :  { %v402_v33 = vpop.eup %401  ;;  %v181_v34 = vmin.f32 %v165_v25, 1.0  ;;  %v166_v35 = vmax.f32 %v150_v26, 0.0  ;;  %v152_v36 = vadd.f32 -0.1, %v136_v27  ;;  %v138_v37 = vmul.f32 1.2, %v400_v28 }
  0x23   :  { %v404_v38 = vpop.eup %403  ;;  %v167_v39 = vmax.f32 %v151_v30, 0.0  ;;  %v153_v40 = vadd.f32 -0.1, %v137_v31  ;;  %v139_v41 = vmul.f32 1.2, %v402_v33  ;;  %419 = vpow2.f32 %v365_v23 }
  0x24   :  { %v252_v42 = vadd.f32 %v236_v59, %v181_v34  ;;  %v182_v46 = vmin.f32 %v166_v35, 1.0  ;;  %v168_v47 = vmax.f32 %v152_v36, 0.0  ;;  %v154_v48 = vadd.f32 -0.1, %v138_v37  ;;  %v406_v51 = vpop.eup %405 }
  0x25   :  { %v183_v52 = vmin.f32 %v167_v39, 1.0  ;;  %v169_v53 = vmax.f32 %v153_v40, 0.0  ;;  %v155_v55 = vadd.f32 -0.1, %v139_v41  ;;  %v140_v56 = vmul.f32 1.2, %v404_v38  ;;  %v408_v57 = vpop.eup %407 }
  0x26   :  { %v275_v58 = vmax.f32 %v252_v42, %v586_v29  ;;  %v253_v63 = vadd.f32 %v237_v60, %v182_v46  ;;  %v184_v59 = vmin.f32 %v168_v47, 1.0  ;;  %v170_v0 = vmax.f32 %v154_v48, 0.0  ;;  %v410_v2 = vpop.eup %409 }
  0x27   :  { %v254_v6 = vadd.f32 %v238_v3, %v183_v52  ;;  %v185_v7 = vmin.f32 %v169_v53, 1.0  ;;  %v171_v9 = vmax.f32 %v155_v55, 0.0  ;;  %v156_v10 = vadd.f32 -0.1, %v140_v56  ;;  %v412_v11 = vpop.eup %411 }
  0x28   :  { %v298_v12 = vmin.f32 %v275_v58, %v592_v43  ;;  %v276_v14 = vmax.f32 %v253_v63, %v586_v29  ;;  %v255_v15 = vadd.f32 %v239_v4, %v184_v59  ;;  %v186_v16 = vmin.f32 %v170_v0, 1.0  ;;  %v206_v58 = vld [vmem:[%s736_s0 + $0x48] sm:$0xff]  ;;  %v207_v59 = vld [vmem:[%s736_s0 + $0x50] sm:$0xff] }
  0x29   :  { %v414_v44 = vpop.eup %413  ;;  %v277_v60 = vmax.f32 %v254_v6, %v586_v29  ;;  %v256_v17 = vadd.f32 %v240_v5, %v185_v7  ;;  %v187_v45 = vmin.f32 %v171_v9, 1.0  ;;  %v172_v3 = vmax.f32 %v156_v10, 0.0  ;;  %v210_v6 = vld [vmem:[%s736_s0 + $0x68] sm:$0xff] }
  0x2a   :  { %v416_v19 = vpop.eup %415  ;;  %v314_v21 = vmul.f32 %v471_v1, %v298_v12  ;;  %v299_v23 = vmin.f32 %v276_v14, %v592_v43  ;;  %v278_v24 = vmax.f32 %v255_v15, %v586_v29  ;;  %v257_v49 = vadd.f32 %v241_v8, %v186_v16 }
  0x2b   :  { %v418_v4 = vpop.eup %417  ;;  %v300_v25 = vmin.f32 %v277_v60, %v592_v43  ;;  %v279_v26 = vmax.f32 %v256_v17, %v586_v29  ;;  %v258_v50 = vadd.f32 %v242_v18, %v187_v45  ;;  %v188_v5 = vmin.f32 %v172_v3, 1.0 }
  0x2c   :  { %330 = vst [vmem:[%s739_s5] sm:$0xff] %v314_v21  ;;  %v315_v27 = vmul.f32 %v471_v1, %v299_v23  ;;  %v301_v28 = vmin.f32 %v278_v24, %v592_v43  ;;  %v280_v54 = vmax.f32 %v257_v49, %v586_v29  ;;  %v141_v8 = vmul.f32 1.2, %v414_v44  ;;  %v211_v44 = vld [vmem:[%s736_s0 + $0x70] sm:$0xff]  ;;  %v212_v49 = vld [vmem:[%s736_s0 + $0x78] sm:$0xff] }
  0x2d   :  { %v420_v30 = vpop.eup %419  ;;  %v316_v31 = vmul.f32 %v471_v1, %v300_v25  ;;  %v302_v33 = vmin.f32 %v279_v26, %v592_v43  ;;  %v281_v61 = vmax.f32 %v258_v50, %v586_v29  ;;  %v259_v18 = vadd.f32 %v243_v22, %v188_v5 }
  0x2e   :  { %331 = vst [vmem:[%s739_s5 + $0x8] sm:$0xff] %v315_v27  ;;  %v317_v34 = vmul.f32 %v471_v1, %v301_v28  ;;  %v303_v35 = vmin.f32 %v280_v54, %v592_v43  ;;  %v157_v36 = vadd.f32 -0.1, %v141_v8  ;;  %v94_v37 = vadd.f32 1.0, %v406_v51 }
  0x2f   :  { %332 = vst [vmem:[%s739_s5 + $0x10] sm:$0xff] %v316_v31  ;;  %v318_v38 = vmul.f32 %v471_v1, %v302_v33  ;;  %v304_v39 = vmin.f32 %v281_v61, %v592_v43  ;;  %v282_v62 = vmax.f32 %v259_v18, %v586_v29  ;;  %v95_v22 = vadd.f32 1.0, %v408_v57 }
  0x30   :  { %333 = vst [vmem:[%s739_s5 + $0x18] sm:$0xff] %v317_v34  ;;  %v319_v40 = vmul.f32 %v471_v1, %v303_v35  ;;  %v173_v41 = vmax.f32 %v157_v36, 0.0  ;;  %421 = vrcp.f32 %v94_v37  ;;  %v96_v42 = vadd.f32 1.0, %v410_v2 }
  0x31   :  { %334 = vst [vmem:[%s739_s5 + $0x20] sm:$0xff] %v318_v38  ;;  %v320_v46 = vmul.f32 %v471_v1, %v304_v39  ;;  %v305_v47 = vmin.f32 %v282_v62, %v592_v43  ;;  %423 = vrcp.f32 %v95_v22  ;;  %v97_v48 = vadd.f32 1.0, %v412_v11 }
  0x32   :  { %335 = vst [vmem:[%s739_s5 + $0x28] sm:$0xff] %v319_v40  ;;  %v189_v51 = vmin.f32 %v173_v41, 1.0  ;;  %425 = vrcp.f32 %v96_v42  ;;  %v98_v52 = vadd.f32 1.0, %v416_v19  ;;  %v99_v53 = vadd.f32 1.0, %v418_v4 }
  0x33   :  { %336 = vst [vmem:[%s739_s5 + $0x30] sm:$0xff] %v320_v46  ;;  %v321_v55 = vmul.f32 %v471_v1, %v305_v47  ;;  %427 = vrcp.f32 %v97_v48  ;;  %v100_v56 = vadd.f32 1.0, %v420_v30  ;;  %v229_v2 = vmul.f32 %v498_v20, %v206_v58 }
  0x34   :  { %v260_v57 = vadd.f32 %v244_v32, %v189_v51  ;;  %429 = vrcp.f32 %v98_v52  ;;  %v209_v32 = vld [vmem:[%s736_s0 + $0x60] sm:$0xff]  ;;  %v230_v7 = vmul.f32 %v498_v20, %v207_v59  ;;  %v231_v9 = vmul.f32 %v498_v20, %v208_v13 }
  0x35   :  { %337 = vst [vmem:[%s739_s5 + $0x38] sm:$0xff] %v321_v55  ;;  %431 = vrcp.f32 %v99_v53  ;;  %v232_v12 = vmul.f32 %v498_v20, %v209_v32  ;;  %v233_v16 = vmul.f32 %v498_v20, %v210_v6  ;;  %v245_v17 = vfloor.f32 %v229_v2 }
  0x36   :  { %v283_v63 = vmax.f32 %v260_v57, %v586_v29  ;;  %433 = vrcp.f32 %v100_v56  ;;  %v246_v21 = vfloor.f32 %v230_v7  ;;  %v247_v24 = vfloor.f32 %v231_v9 }
  0x37   :  { %v248_v50 = vfloor.f32 %v232_v12  ;;  %v234_v5 = vmul.f32 %v498_v20, %v211_v44  ;;  %v249_v30 = vfloor.f32 %v233_v16  ;;  %v235_v34 = vmul.f32 %v498_v20, %v212_v49 }
  0x38   :  { %v306_v0 = vmin.f32 %v283_v63, %v592_v43 }
  0x39   :  { %v250_v40 = vfloor.f32 %v234_v5  ;;  %v251_v53 = vfloor.f32 %v235_v34 }
  0x3a   :  { %v422_v10 = vpop.eup %421  ;;  %v322_v11 = vmul.f32 %v471_v1, %v306_v0 }
  0x3b   :  { %v424_v14 = vpop.eup %423  ;;  %v142_v15 = vmul.f32 1.2, %v422_v10 }
  0x3c   :  { %v426_v60 = vpop.eup %425  ;;  %338 = vst [vmem:[%s739_s5 + $0x40] sm:$0xff] %v322_v11  ;;  %v143_v45 = vmul.f32 1.2, %v424_v14 }
  0x3d   :  { %v428_v3 = vpop.eup %427  ;;  %v158_v19 = vadd.f32 -0.1, %v142_v15  ;;  %v144_v23 = vmul.f32 1.2, %v426_v60 }
  0x3e   :  { %v430_v4 = vpop.eup %429  ;;  %v159_v25 = vadd.f32 -0.1, %v143_v45  ;;  %v145_v26 = vmul.f32 1.2, %v428_v3 }
  0x3f   :  { %v432_v27 = vpop.eup %431  ;;  %v174_v28 = vmax.f32 %v158_v19, 0.0  ;;  %v160_v54 = vadd.f32 -0.1, %v144_v23  ;;  %v146_v8 = vmul.f32 1.2, %v430_v4 }
  0x40   :  { %v434_v31 = vpop.eup %433  ;;  %v175_v33 = vmax.f32 %v159_v25, 0.0  ;;  %v161_v61 = vadd.f32 -0.1, %v145_v26  ;;  %v147_v18 = vmul.f32 1.2, %v432_v27 }
  0x41   :  { %v190_v35 = vmin.f32 %v174_v28, 1.0  ;;  %v176_v36 = vmax.f32 %v160_v54, 0.0  ;;  %v162_v37 = vadd.f32 -0.1, %v146_v8  ;;  %v148_v38 = vmul.f32 1.2, %v434_v31 }
  0x42   :  { %v191_v39 = vmin.f32 %v175_v33, 1.0  ;;  %v177_v62 = vmax.f32 %v161_v61, 0.0  ;;  %v163_v22 = vadd.f32 -0.1, %v147_v18 }
  0x43   :  { %v261_v41 = vadd.f32 %v245_v17, %v190_v35  ;;  %v192_v42 = vmin.f32 %v176_v36, 1.0  ;;  %v178_v46 = vmax.f32 %v162_v37, 0.0  ;;  %v164_v47 = vadd.f32 -0.1, %v148_v38 }
  0x44   :  { %v262_v48 = vadd.f32 %v246_v21, %v191_v39  ;;  %v193_v51 = vmin.f32 %v177_v62, 1.0  ;;  %v179_v52 = vmax.f32 %v163_v22, 0.0 }
  0x45   :  { %v284_v55 = vmax.f32 %v261_v41, %v586_v29  ;;  %v263_v56 = vadd.f32 %v247_v24, %v192_v42  ;;  %v194_v20 = vmin.f32 %v178_v46, 1.0  ;;  %v180_v57 = vmax.f32 %v164_v47, 0.0 }
  0x46   :  { %v285_v58 = vmax.f32 %v262_v48, %v586_v29  ;;  %v264_v63 = vadd.f32 %v248_v50, %v193_v51  ;;  %v195_v59 = vmin.f32 %v179_v52, 1.0 }
  0x47   :  { %v307_v13 = vmin.f32 %v284_v55, %v592_v43  ;;  %v286_v32 = vmax.f32 %v263_v56, %v586_v29  ;;  %v265_v0 = vadd.f32 %v249_v30, %v194_v20  ;;  %v196_v2 = vmin.f32 %v180_v57, 1.0 }
  0x48   :  { %v308_v6 = vmin.f32 %v285_v58, %v592_v43  ;;  %v287_v7 = vmax.f32 %v264_v63, %v586_v29  ;;  %v266_v9 = vadd.f32 %v250_v40, %v195_v59 }
  0x49   :  { %v323_v10 = vmul.f32 %v471_v1, %v307_v13  ;;  %v309_v11 = vmin.f32 %v286_v32, %v592_v43  ;;  %v288_v12 = vmax.f32 %v265_v0, %v586_v29  ;;  %v267_v14 = vadd.f32 %v251_v53, %v196_v2 }
  0x4a   :  { %v324_v15 = vmul.f32 %v471_v1, %v308_v6  ;;  %v310_v16 = vmin.f32 %v287_v7, %v592_v43  ;;  %v289_v44 = vmax.f32 %v266_v9, %v586_v29 }
  0x4b   :  { %339 = vst [vmem:[%s739_s5 + $0x48] sm:$0xff] %v323_v10  ;;  %v325_v60 = vmul.f32 %v471_v1, %v309_v11  ;;  %v311_v17 = vmin.f32 %v288_v12, %v592_v43  ;;  %v290_v45 = vmax.f32 %v267_v14, %v586_v29 }
  0x4c   :  { %340 = vst [vmem:[%s739_s5 + $0x50] sm:$0xff] %v324_v15  ;;  %v326_v3 = vmul.f32 %v471_v1, %v310_v16  ;;  %v312_v19 = vmin.f32 %v289_v44, %v592_v43 }
  0x4d   :  { %341 = vst [vmem:[%s739_s5 + $0x58] sm:$0xff] %v325_v60  ;;  %v327_v21 = vmul.f32 %v471_v1, %v311_v17  ;;  %v313_v23 = vmin.f32 %v290_v45, %v592_v43 }
  0x4e   :  { %342 = vst [vmem:[%s739_s5 + $0x60] sm:$0xff] %v326_v3  ;;  %v328_v29 = vmul.f32 %v471_v1, %v312_v19 }
  0x4f   :  { %343 = vst [vmem:[%s739_s5 + $0x68] sm:$0xff] %v327_v21  ;;  %v329_v24 = vmul.f32 %v471_v1, %v313_v23 }
  0x50   :  { %344 = vst [vmem:[%s739_s5 + $0x70] sm:$0xff] %v328_v29 }
  0x51   :  { %345 = vst [vmem:[%s739_s5 + $0x78] sm:$0xff] %v329_v24 }

// kernel: adaq_conv_forward.3
= control target key start
LH: loop header
LB: loop body
LE: loop exit
PB: predicated region body
PF: predicated region fallthrough
CT: control target
= control target key end

     0   :  { %10 = vsyncpa [#allocation3], 0  ;;  %s1256_s18 = smov 0   ;;  %s1984_s0 = inlined_call_operand.vmem [shape: f32[512,128], index: 0, kind: input, shape index: {}]   ;;  %s1985_s1 = inlined_call_operand.vmem [shape: f32[128,128], index: 1, kind: input, shape index: {}]   ;;  %s1986_s2 = inlined_call_operand.vmem [shape: f32[1,128], index: 2, kind: input, shape index: {}]   ;;  %s1987_s3 = inlined_call_operand.vmem [shape: u32[512,128], index: 3, kind: input, shape index: {}]   ;;  %s1988_s4 = inlined_call_operand.vmem [shape: f32[4], index: 4, kind: input, shape index: {}]   ;;  %s1989_s5 = inlined_call_operand.vmem [shape: f32[512,128], index: 5, kind: output, shape index: {}]  }
   0x1 LB: > { %s952_s19 = sadd.s32 4294967295, %s1223_s18   ;;  %p954_p0 = scmp.ge.s32.totalorder %s1223_s18, 1  ;;  %s1223_s18 = sphi %s1256_s18, %s16_s18  }
   0x2   : > { %p162_p1 = scmp.lt.s32.totalorder %s1223_s18, 3  ;;  %s181_s22 = sshll.u32 %s1988_s4, 4  ;;  %s182_s22 = int_to_ptr.vmem [resolvable:$true] %s181_s22 }
   0x3   : > { %p1271_p3 = scmp.eq.s32.totalorder %s952_s19, 0  ;;  %s1198_s25 = scalar_lea.vmem %s182_s22, 16 }
   0x4   : > { %p1267_p2 = pnand %p954_p0, %p162_p1  ;;  %p1199_p6 = scmp.ne.s32.totalorder %s182_s22, %s1198_s25 }
   0x5   : > { %p1206_p10 = scmp.lt.s32.totalorder %s182_s22, %s182_s22  ;;  %p1207_p11 = scmp.lt.s32.totalorder %s1198_s25, %s1198_s25 }
   0x6   : > { %p1183_p4 = pneg %p1267_p2 }
   0x7   : > { %p1208_p12 = por %p1207_p11, %p1206_p10 }
   0x8   : > { %p1184_p5 = pnand %p1271_p3, %p1183_p4 }
   0xa   : > { %p1200_p7 = pneg %p1184_p5 }
   0xc   : > { %p1201_p8 = pnand %p1200_p7, %p1199_p6 }
   0xe   : > { %p1202_p9 = pneg %p1201_p8 }
  0x10   : > { %p1209_p13 = pnand %p1208_p12, %p1202_p9 }
  0x12   : > { %1212 = shalt.err (!%p1209_p13)
}
  0x13   : > { %s1225_s26 = smov [#allocation2]   ;;  %212 = sbr.rel (%p1267_p2) target bundleno = 351 (0x15f), region = 40 }
  0x14   : > { %1186 = dma.vmem_to_smem (!%p1184_p5), %s182_s22, 16, %s1225_s26, [#allocation3]  }
  0x1a   : > { %1218 = dma.done.wait (%p1271_p3), [#allocation3], 16  }
  0x1b   : > { %1220 = vsyncadd (%p1271_p3), [#allocation3], 4294967280 }
  0x1c   : > { %218 = sfence }
  0x1d   : > { %v296_v0 = vld [vmem:[%s1985_s1] sm:$0xff]  ;;  %v297_v1 = vld [vmem:[%s1985_s1 + $0x8] sm:$0xff]  ;;  %v298_v2 = vld [vmem:[%s1985_s1 + $0x10] sm:$0xff]  ;;  %s959_s8 = sshll.u32 %s952_s19, 5  ;;  %s576_s16 = sld [smem:[#allocation2]] }
  0x1e   : > { %v1099_v3 = vpack.c.bf16 %v297_v1, %v296_v0  ;;  %v299_v4 = vld [vmem:[%s1985_s1 + $0x18] sm:$0xff]  ;;  %p247_p0 = scmp.lt.s32.totalorder %s959_s8, 63  ;;  %v300_v6 = vld [vmem:[%s1985_s1 + $0x20] sm:$0xff]  ;;  %v301_v7 = vld [vmem:[%s1985_s1 + $0x28] sm:$0xff]  ;;  %s967_s17 = sld [smem:[#allocation2 + $0x2]] }
  0x1f   : > { %v1103_v5 = vpack.c.bf16 %v299_v4, %v298_v2  ;;  %v1107_v8 = vpack.c.bf16 %v301_v7, %v300_v6  ;;  %v302_v9 = vld [vmem:[%s1985_s1 + $0x30] sm:$0xff]  ;;  %v303_v10 = vld [vmem:[%s1985_s1 + $0x38] sm:$0xff]  ;;  %v304_v14 = vld [vmem:[%s1985_s1 + $0x40] sm:$0xff]  ;;  %s966_s19 = sld [smem:[#allocation2 + $0x1]]  ;;  %s968_s20 = sld [smem:[#allocation2 + $0x3]] }
  0x20   : > { %1100 = vmatprep.subr.bf16.mxu0 %v1099_v3  ;;  %1131 = vmatprep.subr.bf16.mxu1 %v1099_v3  ;;  %s1993_s8 = smov (!%p247_p0, %s959_s8), 63  ;;  %v1111_v13 = vpack.c.bf16 %v303_v10, %v302_v9  ;;  %v305_v15 = vld [vmem:[%s1985_s1 + $0x48] sm:$0xff]  ;;  %v306_v17 = vld [vmem:[%s1985_s1 + $0x50] sm:$0xff]  ;;  %v307_v18 = vld [vmem:[%s1985_s1 + $0x58] sm:$0xff] }
  0x21   : > { %1102 = vmatpush3.bf16.msra.mxu0 %v1099_v3  ;;  %1139 = vmatpush3.bf16.msra.mxu1 %v1099_v3  ;;  %s1303_s15 = sshll.u32 %s1993_s8, 3  ;;  %v1115_v16 = vpack.c.bf16 %v305_v15, %v304_v14  ;;  %v1119_v19 = vpack.c.bf16 %v307_v18, %v306_v17  ;;  %v308_v20 = vld [vmem:[%s1985_s1 + $0x60] sm:$0xff]  ;;  %v309_v21 = vld [vmem:[%s1985_s1 + $0x68] sm:$0xff]  ;;  %v310_v23 = vld [vmem:[%s1985_s1 + $0x70] sm:$0xff] }
  0x22   : > { %1104 = vmatprep.subr.bf16.mxu0 %v1103_v5  ;;  %1132 = vmatprep.subr.bf16.mxu1 %v1103_v5  ;;  %s1315_s23 = scalar_lea.vmem %s1984_s0, %s1303_s15  ;;  %v1123_v22 = vpack.c.bf16 %v309_v21, %v308_v20  ;;  %v311_v24 = vld [vmem:[%s1985_s1 + $0x78] sm:$0xff]  ;;  %s1377_s24 = scalar_lea.vmem %s1987_s3, %s1303_s15  ;;  %v1382_v56 = vld [vmem:[%s1986_s2] ss:$0 sm:$0xff] }
  0x23   : > { %v264_v11 = vld [vmem:[%s1315_s23] sm:$0xff]  ;;  %v1127_v25 = vpack.c.bf16 %v311_v24, %v310_v23  ;;  %v265_v26 = vld [vmem:[%s1315_s23 + $0x8] sm:$0xff]  ;;  %v266_v28 = vld [vmem:[%s1315_s23 + $0x10] sm:$0xff]  ;;  %v1396_v1 = vstv %s576_s16  ;;  %s1492_s28 = scalar_lea.vmem %s1989_s5, %s1303_s15 }
  0x24   : > { %v280_v12 = vld [vmem:[%s1315_s23 + $0x80] sm:$0xff]  ;;  %1051 = vmatprep.mubr.f32.mxu0 %v264_v11  ;;  %v281_v27 = vld [vmem:[%s1315_s23 + $0x88] sm:$0xff]  ;;  %v282_v29 = vld [vmem:[%s1315_s23 + $0x90] sm:$0xff]  ;;  %v1398_v2 = vstv %s967_s17 }
  0x25   : > { %1106 = vmatpush3.bf16.msra.mxu0 %v1103_v5  ;;  %1140 = vmatpush3.bf16.msra.mxu1 %v1103_v5  ;;  %v267_v30 = vld [vmem:[%s1315_s23 + $0x18] sm:$0xff]  ;;  %v268_v32 = vld [vmem:[%s1315_s23 + $0x20] sm:$0xff]  ;;  %v269_v34 = vld [vmem:[%s1315_s23 + $0x28] sm:$0xff]  ;;  %v1415_v9 = vstv %s966_s19 }
  0x26   : > { %1108 = vmatprep.subr.bf16.mxu0 %v1107_v8  ;;  %1133 = vmatprep.subr.bf16.mxu1 %v1107_v8  ;;  %v283_v31 = vld [vmem:[%s1315_s23 + $0x98] sm:$0xff]  ;;  %v284_v33 = vld [vmem:[%s1315_s23 + $0xa0] sm:$0xff]  ;;  %v285_v35 = vld [vmem:[%s1315_s23 + $0xa8] sm:$0xff] }
  0x27   : > { %1075 = vmatprep.mubr.f32.mxu1 %v280_v12  ;;  %v270_v36 = vld [vmem:[%s1315_s23 + $0x30] sm:$0xff]  ;;  %v271_v38 = vld [vmem:[%s1315_s23 + $0x38] sm:$0xff]  ;;  %v272_v40 = vld [vmem:[%s1315_s23 + $0x40] sm:$0xff] }
  0x28   : > { %v286_v37 = vld [vmem:[%s1315_s23 + $0xb0] sm:$0xff]  ;;  %v287_v39 = vld [vmem:[%s1315_s23 + $0xb8] sm:$0xff]  ;;  %v288_v41 = vld [vmem:[%s1315_s23 + $0xc0] sm:$0xff] }
  0x29   : > { %1110 = vmatpush3.bf16.msra.mxu0 %v1107_v8  ;;  %1141 = vmatpush3.bf16.msra.mxu1 %v1107_v8  ;;  %v273_v42 = vld [vmem:[%s1315_s23 + $0x48] sm:$0xff]  ;;  %v274_v44 = vld [vmem:[%s1315_s23 + $0x50] sm:$0xff]  ;;  %v275_v46 = vld [vmem:[%s1315_s23 + $0x58] sm:$0xff]  ;;  %v1413_v8 = vstv %s968_s20 }
  0x2a   : > { %1112 = vmatprep.subr.bf16.mxu0 %v1111_v13  ;;  %1134 = vmatprep.subr.bf16.mxu1 %v1111_v13  ;;  %v289_v43 = vld [vmem:[%s1315_s23 + $0xc8] sm:$0xff]  ;;  %v290_v45 = vld [vmem:[%s1315_s23 + $0xd0] sm:$0xff]  ;;  %v291_v47 = vld [vmem:[%s1315_s23 + $0xd8] sm:$0xff] }
  0x2b   : > { %v276_v48 = vld [vmem:[%s1315_s23 + $0x60] sm:$0xff]  ;;  %v277_v50 = vld [vmem:[%s1315_s23 + $0x68] sm:$0xff]  ;;  %v278_v52 = vld [vmem:[%s1315_s23 + $0x70] sm:$0xff] }
  0x2c   : > { %v292_v49 = vld [vmem:[%s1315_s23 + $0xe0] sm:$0xff]  ;;  %v293_v51 = vld [vmem:[%s1315_s23 + $0xe8] sm:$0xff]  ;;  %v294_v53 = vld [vmem:[%s1315_s23 + $0xf0] sm:$0xff] }
  0x2d   : > { %1114 = vmatpush3.bf16.msra.mxu0 %v1111_v13  ;;  %1142 = vmatpush3.bf16.msra.mxu1 %v1111_v13  ;;  %v279_v54 = vld [vmem:[%s1315_s23 + $0x78] sm:$0xff]  ;;  %v1388_v60 = vld [vmem:[%s1377_s24 + $0x8] sm:$0xff]  ;;  %v1404_v4 = vld [vmem:[%s1377_s24] sm:$0xff] }
  0x2e   : > { %1116 = vmatprep.subr.bf16.mxu0 %v1115_v16  ;;  %1135 = vmatprep.subr.bf16.mxu1 %v1115_v16  ;;  %v295_v55 = vld [vmem:[%s1315_s23 + $0xf8] sm:$0xff]  ;;  %v1394_v62 = vld [vmem:[%s1377_s24 + $0x88] sm:$0xff]  ;;  %v1410_v6 = vld [vmem:[%s1377_s24 + $0x80] sm:$0xff]  ;;  %vm777_vm0 = vcmp.lt.u32.totalorder %v1388_v60, 2147483648  ;;  %vm776_vm2 = vcmp.lt.u32.totalorder %v1404_v4, 2147483648 }
  0x2f   : > { %vm793_vm1 = vcmp.lt.u32.totalorder %v1394_v62, 2147483648  ;;  %vm792_vm3 = vcmp.lt.u32.totalorder %v1410_v6, 2147483648  ;;  %v1434_v18 = vld [vmem:[%s1377_s24 + $0x18] sm:$0xff]  ;;  %v1538_v6 = vld [vmem:[%s1377_s24 + $0x28] sm:$0xff] }
  0x30   : > { %v1440_v20 = vld [vmem:[%s1377_s24 + $0x98] sm:$0xff]  ;;  %vm779_vm4 = vcmp.lt.u32.totalorder %v1434_v18, 2147483648  ;;  %vm781_vm8 = vcmp.lt.u32.totalorder %v1538_v6, 2147483648 }
  0x31   : > { %1118 = vmatpush3.bf16.msra.mxu0 %v1115_v16  ;;  %1143 = vmatpush3.bf16.msra.mxu1 %v1115_v16  ;;  %vm795_vm5 = vcmp.lt.u32.totalorder %v1440_v20, 2147483648 }
  0x32   : > { %1120 = vmatprep.subr.bf16.mxu0 %v1119_v19  ;;  %1136 = vmatprep.subr.bf16.mxu1 %v1119_v19 }
  0x35   : > { %1122 = vmatpush3.bf16.msra.mxu0 %v1119_v19  ;;  %1144 = vmatpush3.bf16.msra.mxu1 %v1119_v19 }
  0x36   : > { %1124 = vmatprep.subr.bf16.mxu0 %v1123_v22  ;;  %1137 = vmatprep.subr.bf16.mxu1 %v1123_v22 }
  0x39   : > { %1126 = vmatpush3.bf16.msra.mxu0 %v1123_v22  ;;  %1145 = vmatpush3.bf16.msra.mxu1 %v1123_v22 }
  0x3a   : > { %1128 = vmatprep.subr.bf16.mxu0 %v1127_v25  ;;  %1138 = vmatprep.subr.bf16.mxu1 %v1127_v25 }
  0x3d   : > { %1130 = vmatpush3.bf16.msra.mxu0 %v1127_v25  ;;  %1146 = vmatpush3.bf16.msra.mxu1 %v1127_v25 }
  0x40   : > { %1052 = vmatmul.mubr.f32.vlgmr.msra.gmra.mrb[0].mxu0 %v265_v26  ;;  %1076 = vmatmul.mubr.f32.vlgmr.msra.gmra.mrb[0].mxu1 %v281_v27  ;;  %v1452_v26 = vld [vmem:[%s1377_s24 + $0x10] sm:$0xff] }
  0x41   : > { %1054 = vmatprep.mubr.f32.mxu0 %v266_v28  ;;  %1078 = vmatprep.mubr.f32.mxu1 %v282_v29  ;;  %v1458_v28 = vld [vmem:[%s1377_s24 + $0x90] sm:$0xff]  ;;  %vm778_vm6 = vcmp.lt.u32.totalorder %v1452_v26, 2147483648 }
  0x42   : > { %vm794_vm7 = vcmp.lt.u32.totalorder %v1458_v28, 2147483648 }
  0x44   : > { %1055 = vmatmul.mubr.f32.gmra.mrb[2].mxu0 %v267_v30  ;;  %1079 = vmatmul.mubr.f32.gmra.mrb[2].mxu1 %v283_v31 }
  0x45   : > { %1057 = vmatprep.mubr.f32.mxu0 %v268_v32  ;;  %1081 = vmatprep.mubr.f32.mxu1 %v284_v33 }
  0x48   : > { %1058 = vmatmul.mubr.f32.gmra.mrb[4].mxu0 %v269_v34  ;;  %1082 = vmatmul.mubr.f32.gmra.mrb[4].mxu1 %v285_v35 }
  0x49   : > { %1060 = vmatprep.mubr.f32.mxu0 %v270_v36  ;;  %1084 = vmatprep.mubr.f32.mxu1 %v286_v37 }
  0x4c   : > { %1061 = vmatmul.mubr.f32.gmra.mrb[6].mxu0 %v271_v38  ;;  %1085 = vmatmul.mubr.f32.gmra.mrb[6].mxu1 %v287_v39 }
  0x4d   : > { %1063 = vmatprep.mubr.f32.mxu0 %v272_v40  ;;  %1087 = vmatprep.mubr.f32.mxu1 %v288_v41 }
  0x50   : > { %1064 = vmatmul.mubr.f32.gmra.mrb[8].mxu0 %v273_v42  ;;  %1088 = vmatmul.mubr.f32.gmra.mrb[8].mxu1 %v289_v43 }
  0x51   : > { %1066 = vmatprep.mubr.f32.mxu0 %v274_v44  ;;  %1090 = vmatprep.mubr.f32.mxu1 %v290_v45 }
  0x54   : > { %1067 = vmatmul.mubr.f32.gmra.mrb[10].mxu0 %v275_v46  ;;  %1091 = vmatmul.mubr.f32.gmra.mrb[10].mxu1 %v291_v47 }
  0x55   : > { %1069 = vmatprep.mubr.f32.mxu0 %v276_v48  ;;  %1093 = vmatprep.mubr.f32.mxu1 %v292_v49 }
  0x58   : > { %1070 = vmatmul.mubr.f32.gmra.mrb[12].mxu0 %v277_v50  ;;  %1094 = vmatmul.mubr.f32.gmra.mrb[12].mxu1 %v293_v51 }
  0x59   : > { %1072 = vmatprep.mubr.f32.mxu0 %v278_v52  ;;  %1096 = vmatprep.mubr.f32.mxu1 %v294_v53 }
  0x5c   : > { %1073 = vmatmul.mubr.f32.gmra.mrb[14].mxu0 %v279_v54  ;;  %1097 = vmatmul.mubr.f32.gmra.mrb[14].mxu1 %v295_v55 }
 0x113   : > { %v1053_v57 = vpop.f32.mrb[0].mxu0  ;;  %v1077_v58 = vpop.f32.mrb[0].mxu1 }
 0x114   : > { %v1385_v59 = vadd.f32 %v1053_v57, %v1382_v56  ;;  %v1391_v61 = vadd.f32 %v1077_v58, %v1382_v56  ;;  %v385_v63 = vpop.f32.mrb[1].mxu0  ;;  %v465_v0 = vpop.f32.mrb[1].mxu1 }
 0x115   : > { %v1401_v3 = vadd.f32 %v1382_v56, %v385_v63  ;;  %v1407_v5 = vadd.f32 %v1382_v56, %v465_v0 }
 0x116   : > { %v545_v7 = vmax.f32 %v1385_v59, 0.0  ;;  %v561_v10 = vmax.f32 %v1391_v61, 0.0 }
 0x117   : > { %v544_v11 = vmax.f32 %v1401_v3, 0.0  ;;  %v560_v12 = vmax.f32 %v1407_v5, 0.0  ;;  %v1056_v13 = vpop.f32.mrb[2].mxu0  ;;  %v1080_v14 = vpop.f32.mrb[2].mxu1 }
 0x118   : > { %v582_v15 = vmul.f32 %v1396_v1, %v545_v7  ;;  %v598_v16 = vmul.f32 %v1396_v1, %v561_v10  ;;  %v1431_v17 = vadd.f32 %v1056_v13, %v1382_v56  ;;  %v1437_v19 = vadd.f32 %v1080_v14, %v1382_v56  ;;  %v395_v21 = vpop.f32.mrb[3].mxu0  ;;  %v475_v22 = vpop.f32.mrb[3].mxu1 }
 0x119   : > { %v581_v23 = vmul.f32 %v1396_v1, %v544_v11  ;;  %v597_v24 = vmul.f32 %v1396_v1, %v560_v12  ;;  %v1449_v25 = vadd.f32 %v1382_v56, %v395_v21  ;;  %v1455_v27 = vadd.f32 %v1382_v56, %v475_v22 }
 0x11a   : > { %v1148_v29 = vround.rtne.f32 %v582_v15  ;;  %v1164_v30 = vround.rtne.f32 %v598_v16  ;;  %v547_v31 = vmax.f32 %v1431_v17, 0.0  ;;  %v563_v32 = vmax.f32 %v1437_v19, 0.0 }
 0x11b   : > { %v1147_v33 = vround.rtne.f32 %v581_v23  ;;  %v1163_v34 = vround.rtne.f32 %v597_v24  ;;  %v546_v35 = vmax.f32 %v1449_v25, 0.0  ;;  %v562_v36 = vmax.f32 %v1455_v27, 0.0  ;;  %v1059_v37 = vpop.f32.mrb[4].mxu0  ;;  %v1083_v38 = vpop.f32.mrb[4].mxu1 }
 0x11c   : > { %v647_v39 = vmax.f32 %v1148_v29, %v1398_v2  ;;  %v663_v40 = vmax.f32 %v1164_v30, %v1398_v2  ;;  %v584_v41 = vmul.f32 %v1396_v1, %v547_v31  ;;  %v600_v42 = vmul.f32 %v1396_v1, %v563_v32  ;;  %v405_v43 = vpop.f32.mrb[5].mxu0  ;;  %v485_v44 = vpop.f32.mrb[5].mxu1 }
 0x11d   : > { %v646_v45 = vmax.f32 %v1147_v33, %v1398_v2  ;;  %v662_v46 = vmax.f32 %v1163_v34, %v1398_v2  ;;  %v583_v47 = vmul.f32 %v1396_v1, %v546_v35  ;;  %v599_v48 = vmul.f32 %v1396_v1, %v562_v36 }
 0x11e   : > { %v680_v49 = vmin.f32 %v647_v39, %v1413_v8  ;;  %v696_v50 = vmin.f32 %v663_v40, %v1413_v8  ;;  %v1150_v51 = vround.rtne.f32 %v584_v41  ;;  %v1166_v52 = vround.rtne.f32 %v600_v42 }
 0x11f   : > { %v679_v53 = vmin.f32 %v646_v45, %v1413_v8  ;;  %v695_v54 = vmin.f32 %v662_v46, %v1413_v8  ;;  %v1149_v55 = vround.rtne.f32 %v583_v47  ;;  %v1165_v57 = vround.rtne.f32 %v599_v48  ;;  %v1062_v58 = vpop.f32.mrb[6].mxu0  ;;  %v1086_v63 = vpop.f32.mrb[6].mxu1  ;;  %v1556_v46 = vld [vmem:[%s1377_s24 + $0x20] sm:$0xff] }
 0x120   : > { %v713_v0 = vmul.f32 %v1415_v9, %v680_v49  ;;  %v729_v13 = vmul.f32 %v1415_v9, %v696_v50  ;;  %v649_v14 = vmax.f32 %v1150_v51, %v1398_v2  ;;  %v665_v15 = vmax.f32 %v1166_v52, %v1398_v2  ;;  %v415_v16 = vpop.f32.mrb[7].mxu0  ;;  %v1498_v21 = vpop.f32.mrb[7].mxu1 }
 0x121   : > { %v712_v22 = vmul.f32 %v1415_v9, %v679_v53  ;;  %v728_v23 = vmul.f32 %v1415_v9, %v695_v54  ;;  %v648_v24 = vmax.f32 %v1149_v55, %v1398_v2  ;;  %v664_v29 = vmax.f32 %v1165_v57, %v1398_v2  ;;  %v1628_v55 = vld [vmem:[%s1377_s24 + $0x30] sm:$0xff] }
 0x122   : > { %v809_v30 = vsel %vm777_vm0, %v713_v0, %v545_v7  ;;  %v825_v33 = vsel %vm793_vm1, %v729_v13, %v561_v10  ;;  %v682_v34 = vmin.f32 %v649_v14, %v1413_v8  ;;  %v698_v39 = vmin.f32 %v665_v15, %v1413_v8 }
 0x123   : > { %841 = vst [vmem:[%s1492_s28 + $0x8] sm:$0xff] %v809_v30  ;;  %857 = vst [vmem:[%s1492_s28 + $0x88] sm:$0xff] %v825_v33  ;;  %v808_v59 = vsel %vm776_vm2, %v712_v22, %v544_v11  ;;  %v824_v60 = vsel %vm792_vm3, %v728_v23, %v560_v12  ;;  %v681_v61 = vmin.f32 %v648_v24, %v1413_v8  ;;  %v1526_v7 = vpop.f32.mrb[8].mxu0  ;;  %v1528_v10 = vpop.f32.mrb[8].mxu1  ;;  %v1544_v12 = vld [vmem:[%s1377_s24 + $0xa8] sm:$0xff]  ;;  %vm780_vm10 = vcmp.lt.u32.totalorder %v1556_v46, 2147483648 }
 0x124   : > { %v697_v62 = vmin.f32 %v664_v29, %v1413_v8  ;;  %840 = vst [vmem:[%s1492_s28] sm:$0xff] %v808_v59  ;;  %856 = vst [vmem:[%s1492_s28 + $0x80] sm:$0xff] %v824_v60  ;;  %v715_v3 = vmul.f32 %v1415_v9, %v682_v34  ;;  %v731_v4 = vmul.f32 %v1415_v9, %v698_v39  ;;  %v1546_v40 = vpop.f32.mrb[9].mxu0  ;;  %v1548_v41 = vpop.f32.mrb[9].mxu1  ;;  %vm797_vm9 = vcmp.lt.u32.totalorder %v1544_v12, 2147483648 }
 0x125   : > { %v1535_v5 = vadd.f32 %v1059_v37, %v1382_v56  ;;  %v1541_v11 = vadd.f32 %v1083_v38, %v1382_v56  ;;  %v714_v42 = vmul.f32 %v1415_v9, %v681_v61  ;;  %v1553_v37 = vadd.f32 %v1382_v56, %v405_v43  ;;  %v1562_v38 = vld [vmem:[%s1377_s24 + $0xa0] sm:$0xff] }
 0x126   : > { %v730_v45 = vmul.f32 %v1415_v9, %v697_v62  ;;  %v1559_v47 = vadd.f32 %v1382_v56, %v485_v44  ;;  %v811_v48 = vsel %vm779_vm4, %v715_v3, %v547_v31  ;;  %v827_v43 = vsel %vm795_vm5, %v731_v4, %v563_v32  ;;  %v1606_v32 = vld [vmem:[%s1377_s24 + $0x38] sm:$0xff] }
 0x127   : > { %v549_v49 = vmax.f32 %v1535_v5, 0.0  ;;  %v565_v50 = vmax.f32 %v1541_v11, 0.0  ;;  %843 = vst [vmem:[%s1492_s28 + $0x18] sm:$0xff] %v811_v48  ;;  %859 = vst [vmem:[%s1492_s28 + $0x98] sm:$0xff] %v827_v43  ;;  %v810_v17 = vsel %vm778_vm6, %v714_v42, %v546_v35  ;;  %v548_v19 = vmax.f32 %v1553_v37, 0.0  ;;  %v1588_v31 = vpop.f32.mrb[10].mxu0 }
 0x128   : > { %v826_v18 = vsel %vm794_vm7, %v730_v45, %v562_v36  ;;  %v564_v20 = vmax.f32 %v1559_v47, 0.0  ;;  %v1590_v25 = vpop.f32.mrb[10].mxu1  ;;  %842 = vst [vmem:[%s1492_s28 + $0x10] sm:$0xff] %v810_v17  ;;  %vm796_vm11 = vcmp.lt.u32.totalorder %v1562_v38, 2147483648  ;;  %v1603_v28 = vadd.f32 %v1062_v58, %v1382_v56  ;;  %v1612_v36 = vld [vmem:[%s1377_s24 + $0xb8] sm:$0xff]  ;;  %v1614_v44 = vpop.f32.mrb[11].mxu0 }
 0x129   : > { %858 = vst [vmem:[%s1492_s28 + $0x90] sm:$0xff] %v826_v18  ;;  %v586_v26 = vmul.f32 %v1396_v1, %v549_v49  ;;  %v602_v27 = vmul.f32 %v1396_v1, %v565_v50  ;;  %v1609_v35 = vadd.f32 %v1086_v63, %v1382_v56  ;;  %v1616_v51 = vpop.f32.mrb[11].mxu1  ;;  %v585_v52 = vmul.f32 %v1396_v1, %v548_v19  ;;  %v1635_v58 = vld [vmem:[%s1377_s24 + $0xb0] sm:$0xff]  ;;  %v1720_v47 = vld [vmem:[%s1377_s24 + $0x48] sm:$0xff] }
 0x12a   : > { %v601_v53 = vmul.f32 %v1396_v1, %v564_v20  ;;  %v1625_v54 = vadd.f32 %v1382_v56, %v415_v16  ;;  %v1632_v57 = vadd.f32 %v1382_v56, %v1498_v21  ;;  %v551_v13 = vmax.f32 %v1603_v28, 0.0 }
 0x12b   : > { %v1152_v63 = vround.rtne.f32 %v586_v26  ;;  %v1168_v0 = vround.rtne.f32 %v602_v27  ;;  %v567_v14 = vmax.f32 %v1609_v35, 0.0  ;;  %v1151_v15 = vround.rtne.f32 %v585_v52  ;;  %v1643_v21 = vpop.f32.mrb[12].mxu0  ;;  %v1645_v24 = vpop.f32.mrb[12].mxu1 }
 0x12c   : > { %v1167_v22 = vround.rtne.f32 %v601_v53  ;;  %vm783_vm12 = vcmp.lt.u32.totalorder %v1606_v32, 2147483648  ;;  %vm799_vm13 = vcmp.lt.u32.totalorder %v1612_v36, 2147483648  ;;  %v550_v16 = vmax.f32 %v1625_v54, 0.0  ;;  %v1657_v39 = vpop.f32.mrb[13].mxu0  ;;  %v1659_v59 = vpop.f32.mrb[13].mxu1 }
 0x12d   : > { %v566_v23 = vmax.f32 %v1632_v57, 0.0  ;;  %v651_v29 = vmax.f32 %v1152_v63, %v1398_v2  ;;  %v667_v30 = vmax.f32 %v1168_v0, %v1398_v2  ;;  %v588_v33 = vmul.f32 %v1396_v1, %v551_v13  ;;  %v1784_v57 = vld [vmem:[%s1377_s24 + $0x58] sm:$0xff] }
 0x12e   : > { %v604_v34 = vmul.f32 %v1396_v1, %v567_v14  ;;  %vm782_vm14 = vcmp.lt.u32.totalorder %v1628_v55, 2147483648  ;;  %vm798_vm15 = vcmp.lt.u32.totalorder %v1635_v58, 2147483648  ;;  %v650_v60 = vmax.f32 %v1151_v15, %v1398_v2 }
 0x12f   : > { %v666_v61 = vmax.f32 %v1167_v22, %v1398_v2  ;;  %v587_v62 = vmul.f32 %v1396_v1, %v550_v16  ;;  %v603_v3 = vmul.f32 %v1396_v1, %v566_v23  ;;  %v684_v4 = vmin.f32 %v651_v29, %v1413_v8  ;;  %v1673_v27 = vpop.f32.mrb[14].mxu0  ;;  %v1675_v52 = vpop.f32.mrb[14].mxu1 }
 0x130   : > { %v700_v42 = vmin.f32 %v667_v30, %v1413_v8  ;;  %v1154_v45 = vround.rtne.f32 %v588_v33  ;;  %v1170_v48 = vround.rtne.f32 %v604_v34  ;;  %v683_v43 = vmin.f32 %v650_v60, %v1413_v8  ;;  %v1681_v22 = vpop.f32.mrb[15].mxu0  ;;  %v1683_v29 = vpop.f32.mrb[15].mxu1 }
 0x131   : > { %v699_v17 = vmin.f32 %v666_v61, %v1413_v8  ;;  %v1153_v18 = vround.rtne.f32 %v587_v62  ;;  %v1169_v26 = vround.rtne.f32 %v603_v3  ;;  %v717_v53 = vmul.f32 %v1415_v9, %v684_v4 }
 0x132   : > { %v733_v63 = vmul.f32 %v1415_v9, %v700_v42  ;;  %v653_v0 = vmax.f32 %v1154_v45, %v1398_v2  ;;  %v669_v15 = vmax.f32 %v1170_v48, %v1398_v2  ;;  %v716_v30 = vmul.f32 %v1415_v9, %v683_v43  ;;  %v1736_v45 = vld [vmem:[%s1377_s24 + $0x40] sm:$0xff] }
 0x133   : > { %v732_v33 = vmul.f32 %v1415_v9, %v699_v17  ;;  %v652_v34 = vmax.f32 %v1153_v18, %v1398_v2  ;;  %v668_v60 = vmax.f32 %v1169_v26, %v1398_v2  ;;  %v813_v61 = vsel %vm781_vm8, %v717_v53, %v549_v49  ;;  %v1800_v18 = vld [vmem:[%s1377_s24 + $0x50] sm:$0xff] }
 0x134   : > { %v829_v62 = vsel %vm797_vm9, %v733_v63, %v565_v50  ;;  %v686_v3 = vmin.f32 %v653_v0, %v1413_v8  ;;  %v702_v4 = vmin.f32 %v669_v15, %v1413_v8  ;;  %845 = vst [vmem:[%s1492_s28 + $0x28] sm:$0xff] %v813_v61  ;;  %v812_v5 = vsel %vm780_vm10, %v716_v30, %v548_v19  ;;  %v1727_v50 = vld [vmem:[%s1377_s24 + $0xc8] sm:$0xff]  ;;  %v1807_v26 = vld [vmem:[%s1377_s24 + $0xd0] sm:$0xff] }
 0x135   : > { %861 = vst [vmem:[%s1492_s28 + $0xa8] sm:$0xff] %v829_v62  ;;  %v828_v6 = vsel %vm796_vm11, %v732_v33, %v564_v20  ;;  %v685_v11 = vmin.f32 %v652_v34, %v1413_v8  ;;  %v701_v12 = vmin.f32 %v668_v60, %v1413_v8  ;;  %844 = vst [vmem:[%s1492_s28 + $0x20] sm:$0xff] %v812_v5  ;;  %vm785_vm0 = vcmp.lt.u32.totalorder %v1720_v47, 2147483648 }
 0x136   : > { %860 = vst [vmem:[%s1492_s28 + $0xa0] sm:$0xff] %v828_v6  ;;  %v719_v49 = vmul.f32 %v1415_v9, %v686_v3  ;;  %v735_v37 = vmul.f32 %v1415_v9, %v702_v4  ;;  %v1717_v46 = vadd.f32 %v1526_v7, %v1382_v56  ;;  %v1724_v38 = vadd.f32 %v1528_v10, %v1382_v56  ;;  %v1743_v10 = vld [vmem:[%s1377_s24 + $0xc0] sm:$0xff] }
 0x137   : > { %v718_v19 = vmul.f32 %v1415_v9, %v685_v11  ;;  %v734_v20 = vmul.f32 %v1415_v9, %v701_v12  ;;  %v1733_v42 = vadd.f32 %v1382_v56, %v1546_v40  ;;  %v1740_v7 = vadd.f32 %v1382_v56, %v1548_v41 }
 0x138   : > { %v815_v48 = vsel %vm783_vm12, %v719_v49, %v551_v13  ;;  %v831_v40 = vsel %vm799_vm13, %v735_v37, %v567_v14  ;;  %v553_v43 = vmax.f32 %v1717_v46, 0.0  ;;  %v569_v17 = vmax.f32 %v1724_v38, 0.0  ;;  %v1791_v13 = vld [vmem:[%s1377_s24 + $0xd8] sm:$0xff] }
 0x139   : > { %847 = vst [vmem:[%s1492_s28 + $0x38] sm:$0xff] %v815_v48  ;;  %863 = vst [vmem:[%s1492_s28 + $0xb8] sm:$0xff] %v831_v40  ;;  %v814_v41 = vsel %vm782_vm14, %v718_v19, %v550_v16  ;;  %v830_v28 = vsel %vm798_vm15, %v734_v20, %v566_v23  ;;  %vm801_vm1 = vcmp.lt.u32.totalorder %v1727_v50, 2147483648  ;;  %v552_v32 = vmax.f32 %v1733_v42, 0.0 }
 0x13a   : > { %v568_v35 = vmax.f32 %v1740_v7, 0.0  ;;  %846 = vst [vmem:[%s1492_s28 + $0x30] sm:$0xff] %v814_v41  ;;  %862 = vst [vmem:[%s1492_s28 + $0xb0] sm:$0xff] %v830_v28  ;;  %v590_v36 = vmul.f32 %v1396_v1, %v553_v43  ;;  %v606_v54 = vmul.f32 %v1396_v1, %v569_v17  ;;  %vm784_vm2 = vcmp.lt.u32.totalorder %v1736_v45, 2147483648 }
 0x13b   : > { %vm800_vm3 = vcmp.lt.u32.totalorder %v1743_v10, 2147483648  ;;  %v1781_v55 = vadd.f32 %v1588_v31, %v1382_v56  ;;  %v1788_v58 = vadd.f32 %v1590_v25, %v1382_v56  ;;  %v589_v14 = vmul.f32 %v1396_v1, %v552_v32 }
 0x13c   : > { %v605_v16 = vmul.f32 %v1396_v1, %v568_v35  ;;  %v1797_v23 = vadd.f32 %v1382_v56, %v1614_v44  ;;  %v1804_v31 = vadd.f32 %v1382_v56, %v1616_v51  ;;  %v1156_v25 = vround.rtne.f32 %v590_v36 }
 0x13d   : > { %v1172_v53 = vround.rtne.f32 %v606_v54  ;;  %v555_v63 = vmax.f32 %v1781_v55, 0.0  ;;  %v571_v0 = vmax.f32 %v1788_v58, 0.0  ;;  %v1155_v15 = vround.rtne.f32 %v589_v14 }
 0x13e   : > { %v1171_v30 = vround.rtne.f32 %v605_v16  ;;  %vm787_vm4 = vcmp.lt.u32.totalorder %v1784_v57, 2147483648  ;;  %vm803_vm5 = vcmp.lt.u32.totalorder %v1791_v13, 2147483648  ;;  %v554_v44 = vmax.f32 %v1797_v23, 0.0 }
 0x13f   : > { %v570_v33 = vmax.f32 %v1804_v31, 0.0  ;;  %v655_v51 = vmax.f32 %v1156_v25, %v1398_v2  ;;  %v671_v34 = vmax.f32 %v1172_v53, %v1398_v2  ;;  %v592_v60 = vmul.f32 %v1396_v1, %v555_v63 }
 0x140   : > { %v608_v61 = vmul.f32 %v1396_v1, %v571_v0  ;;  %vm786_vm6 = vcmp.lt.u32.totalorder %v1800_v18, 2147483648  ;;  %vm802_vm7 = vcmp.lt.u32.totalorder %v1807_v26, 2147483648  ;;  %v654_v62 = vmax.f32 %v1155_v15, %v1398_v2  ;;  %v1880_v15 = vld [vmem:[%s1377_s24 + $0x60] sm:$0xff]  ;;  %v1916_v26 = vld [vmem:[%s1377_s24 + $0x78] sm:$0xff] }
 0x141   : > { %v670_v3 = vmax.f32 %v1171_v30, %v1398_v2  ;;  %v591_v4 = vmul.f32 %v1396_v1, %v554_v44  ;;  %v607_v5 = vmul.f32 %v1396_v1, %v570_v33  ;;  %v688_v6 = vmin.f32 %v655_v51, %v1413_v8 }
 0x142   : > { %v704_v11 = vmin.f32 %v671_v34, %v1413_v8  ;;  %v1158_v12 = vround.rtne.f32 %v592_v60  ;;  %v1174_v49 = vround.rtne.f32 %v608_v61  ;;  %v687_v37 = vmin.f32 %v654_v62, %v1413_v8 }
 0x143   : > { %v703_v19 = vmin.f32 %v670_v3, %v1413_v8  ;;  %v1157_v20 = vround.rtne.f32 %v591_v4  ;;  %v1173_v42 = vround.rtne.f32 %v607_v5  ;;  %v721_v7 = vmul.f32 %v1415_v9, %v688_v6 }
 0x144   : > { %v737_v48 = vmul.f32 %v1415_v9, %v704_v11  ;;  %v657_v40 = vmax.f32 %v1158_v12, %v1398_v2  ;;  %v673_v41 = vmax.f32 %v1174_v49, %v1398_v2  ;;  %v720_v28 = vmul.f32 %v1415_v9, %v687_v37 }
 0x145   : > { %v736_v36 = vmul.f32 %v1415_v9, %v703_v19  ;;  %v656_v54 = vmax.f32 %v1157_v20, %v1398_v2  ;;  %v672_v55 = vmax.f32 %v1173_v42, %v1398_v2  ;;  %v817_v58 = vsel %vm785_vm0, %v721_v7, %v553_v43 }
 0x146   : > { %v833_v14 = vsel %vm801_vm1, %v737_v48, %v569_v17  ;;  %v690_v16 = vmin.f32 %v657_v40, %v1413_v8  ;;  %v706_v23 = vmin.f32 %v673_v41, %v1413_v8  ;;  %849 = vst [vmem:[%s1492_s28 + $0x48] sm:$0xff] %v817_v58  ;;  %v816_v46 = vsel %vm784_vm2, %v720_v28, %v552_v32  ;;  %v1864_v32 = vld [vmem:[%s1377_s24 + $0x68] sm:$0xff] }
 0x147   : > { %865 = vst [vmem:[%s1492_s28 + $0xc8] sm:$0xff] %v833_v14  ;;  %v832_v47 = vsel %vm800_vm3, %v736_v36, %v568_v35  ;;  %v689_v38 = vmin.f32 %v656_v54, %v1413_v8  ;;  %v705_v50 = vmin.f32 %v672_v55, %v1413_v8  ;;  %848 = vst [vmem:[%s1492_s28 + $0x40] sm:$0xff] %v816_v46  ;;  %v1871_v35 = vld [vmem:[%s1377_s24 + $0xe8] sm:$0xff]  ;;  %vm789_vm8 = vcmp.lt.u32.totalorder %v1864_v32, 2147483648 }
 0x148   : > { %864 = vst [vmem:[%s1492_s28 + $0xc0] sm:$0xff] %v832_v47  ;;  %v723_v43 = vmul.f32 %v1415_v9, %v690_v16  ;;  %v739_v17 = vmul.f32 %v1415_v9, %v706_v23  ;;  %v1861_v45 = vadd.f32 %v1643_v21, %v1382_v56  ;;  %v1868_v10 = vadd.f32 %v1645_v24, %v1382_v56  ;;  %v1887_v24 = vld [vmem:[%s1377_s24 + $0xe0] sm:$0xff] }
 0x149   : > { %v722_v31 = vmul.f32 %v1415_v9, %v689_v38  ;;  %v738_v25 = vmul.f32 %v1415_v9, %v705_v50  ;;  %v1877_v53 = vadd.f32 %v1382_v56, %v1657_v39  ;;  %v1884_v21 = vadd.f32 %v1382_v56, %v1659_v59 }
 0x14a   : > { %v819_v30 = vsel %vm787_vm4, %v723_v43, %v555_v63  ;;  %v835_v51 = vsel %vm803_vm5, %v739_v17, %v571_v0  ;;  %v557_v34 = vmax.f32 %v1861_v45, 0.0  ;;  %v573_v39 = vmax.f32 %v1868_v10, 0.0  ;;  %v758_v43 = vld [vmem:[%s1377_s24 + $0x70] sm:$0xff] }
 0x14b   : > { %851 = vst [vmem:[%s1492_s28 + $0x58] sm:$0xff] %v819_v30  ;;  %867 = vst [vmem:[%s1492_s28 + $0xd8] sm:$0xff] %v835_v51  ;;  %v818_v59 = vsel %vm786_vm6, %v722_v31, %v554_v44  ;;  %v834_v60 = vsel %vm802_vm7, %v738_v25, %v570_v33  ;;  %vm805_vm9 = vcmp.lt.u32.totalorder %v1871_v35, 2147483648  ;;  %v556_v57 = vmax.f32 %v1877_v53, 0.0  ;;  %v775_v33 = vld [vmem:[%s1377_s24 + $0xf8] sm:$0xff]  ;;  %v774_v45 = vld [vmem:[%s1377_s24 + $0xf0] sm:$0xff] }
 0x14c   : > { %v572_v13 = vmax.f32 %v1884_v21, 0.0  ;;  %850 = vst [vmem:[%s1492_s28 + $0x50] sm:$0xff] %v818_v59  ;;  %866 = vst [vmem:[%s1492_s28 + $0xd0] sm:$0xff] %v834_v60  ;;  %v594_v63 = vmul.f32 %v1396_v1, %v557_v34  ;;  %v610_v0 = vmul.f32 %v1396_v1, %v573_v39  ;;  %vm788_vm10 = vcmp.lt.u32.totalorder %v1880_v15, 2147483648 }
 0x14d   : > { %vm804_vm11 = vcmp.lt.u32.totalorder %v1887_v24, 2147483648  ;;  %v1913_v18 = vadd.f32 %v1673_v27, %v1382_v56  ;;  %v1920_v44 = vadd.f32 %v1675_v52, %v1382_v56  ;;  %v593_v61 = vmul.f32 %v1396_v1, %v556_v57 }
 0x14e   : > { %v609_v62 = vmul.f32 %v1396_v1, %v572_v13  ;;  %v456_v3 = vadd.f32 %v1382_v56, %v1681_v22  ;;  %v536_v4 = vadd.f32 %v1382_v56, %v1683_v29  ;;  %v1160_v5 = vround.rtne.f32 %v594_v63 }
 0x14f   : > { %v1176_v27 = vround.rtne.f32 %v610_v0  ;;  %v559_v6 = vmax.f32 %v1913_v18, 0.0  ;;  %v575_v11 = vmax.f32 %v1920_v44, 0.0  ;;  %v1159_v12 = vround.rtne.f32 %v593_v61 }
 0x150   : > { %v1175_v52 = vround.rtne.f32 %v609_v62  ;;  %vm791_vm12 = vcmp.lt.u32.totalorder %v1916_v26, 2147483648  ;;  %vm807_vm13 = vcmp.lt.u32.totalorder %v775_v33, 2147483648  ;;  %v558_v49 = vmax.f32 %v456_v3, 0.0 }
 0x151   : > { %v574_v37 = vmax.f32 %v536_v4, 0.0  ;;  %v659_v19 = vmax.f32 %v1160_v5, %v1398_v2  ;;  %v675_v22 = vmax.f32 %v1176_v27, %v1398_v2  ;;  %v596_v20 = vmul.f32 %v1396_v1, %v559_v6 }
 0x152   : > { %v612_v56 = vmul.f32 %v1396_v1, %v575_v11  ;;  %v658_v29 = vmax.f32 %v1159_v12, %v1398_v2  ;;  %v674_v42 = vmax.f32 %v1175_v52, %v1398_v2  ;;  %v595_v7 = vmul.f32 %v1396_v1, %v558_v49 }
 0x153   : > { %v611_v48 = vmul.f32 %v1396_v1, %v574_v37  ;;  %v692_v40 = vmin.f32 %v659_v19, %v1413_v8  ;;  %v708_v41 = vmin.f32 %v675_v22, %v1413_v8  ;;  %v1162_v28 = vround.rtne.f32 %v596_v20 }
 0x154   : > { %v1178_v36 = vround.rtne.f32 %v612_v56  ;;  %v691_v54 = vmin.f32 %v658_v29, %v1413_v8  ;;  %v707_v55 = vmin.f32 %v674_v42, %v1413_v8  ;;  %v1161_v58 = vround.rtne.f32 %v595_v7 }
 0x155   : > { %v1177_v14 = vround.rtne.f32 %v611_v48  ;;  %v725_v16 = vmul.f32 %v1415_v9, %v692_v40  ;;  %v741_v1 = vmul.f32 %v1415_v9, %v708_v41  ;;  %v661_v23 = vmax.f32 %v1162_v28, %v1398_v2 }
 0x156   : > { %v677_v46 = vmax.f32 %v1178_v36, %v1398_v2  ;;  %v724_v47 = vmul.f32 %v1415_v9, %v691_v54  ;;  %v740_v38 = vmul.f32 %v1415_v9, %v707_v55  ;;  %v660_v50 = vmax.f32 %v1161_v58, %v1398_v2 }
 0x157   : > { %v676_v17 = vmax.f32 %v1177_v14, %v1398_v2  ;;  %v821_v10 = vsel %vm789_vm8, %v725_v16, %v557_v34  ;;  %v837_v31 = vsel %vm805_vm9, %v741_v1, %v573_v39  ;;  %v694_v25 = vmin.f32 %v661_v23, %v1413_v8 }
 0x158   : > { %v710_v53 = vmin.f32 %v677_v46, %v1413_v8  ;;  %853 = vst [vmem:[%s1492_s28 + $0x68] sm:$0xff] %v821_v10  ;;  %869 = vst [vmem:[%s1492_s28 + $0xe8] sm:$0xff] %v837_v31  ;;  %v820_v21 = vsel %vm788_vm10, %v724_v47, %v556_v57  ;;  %v836_v2 = vsel %vm804_vm11, %v740_v38, %v572_v13  ;;  %vm790_vm14 = vcmp.lt.u32.totalorder %v758_v43, 2147483648 }
 0x159   : > { %v693_v32 = vmin.f32 %v660_v50, %v1413_v8  ;;  %v709_v35 = vmin.f32 %v676_v17, %v1413_v8  ;;  %852 = vst [vmem:[%s1492_s28 + $0x60] sm:$0xff] %v820_v21  ;;  %868 = vst [vmem:[%s1492_s28 + $0xe0] sm:$0xff] %v836_v2  ;;  %v727_v30 = vmul.f32 %v1415_v9, %v694_v25  ;;  %vm806_vm15 = vcmp.lt.u32.totalorder %v774_v45, 2147483648 }
 0x15a   : > { %v743_v51 = vmul.f32 %v1415_v9, %v710_v53 }
 0x15b   : > { %v726_v15 = vmul.f32 %v1415_v9, %v693_v32  ;;  %v742_v34 = vmul.f32 %v1415_v9, %v709_v35  ;;  %v823_v24 = vsel %vm791_vm12, %v727_v30, %v559_v6 }
 0x15c   : > { %v839_v39 = vsel %vm807_vm13, %v743_v51, %v575_v11  ;;  %855 = vst [vmem:[%s1492_s28 + $0x78] sm:$0xff] %v823_v24 }
 0x15d   : > { %871 = vst [vmem:[%s1492_s28 + $0xf8] sm:$0xff] %v839_v39  ;;  %v822_v8 = vsel %vm790_vm14, %v726_v15, %v558_v49  ;;  %v838_v59 = vsel %vm806_vm15, %v742_v34, %v574_v37 }
 0x15e   : > { %854 = vst [vmem:[%s1492_s28 + $0x70] sm:$0xff] %v822_v8  ;;  %870 = vst [vmem:[%s1492_s28 + $0xf0] sm:$0xff] %v838_v59 }
 0x15f PF: > { %s16_s18 = sadd.s32 1, %s1223_s18  }
 0x160   : > { %p13_p1 = scmp.ge.s32.totalorder %s16_s18, 4  }
 0x162   :  { %15 = sbr.rel (!%p13_p1) target bundleno = 1 (0x1), region = 78 }
 0x169   :  { %894 = vsyncpa [#allocation3], 1 }
 0x16a   :  { %896 = vsyncpa [#allocation3 + $0x1], 1 }

</bundles_post_ra>
